<compile_context>
chip_gen: v7x
topology: tpu7x:2x2x1
jax: 0.10.0
libtpu: 0.0.40
codegen_flags: <defaults>
</compile_context>

<pallas_src>
import numpy as np
import jax
import jax.numpy as jnp
from jax.experimental import pallas as pl
from jax.experimental.pallas import tpu as pltpu

KERNEL_SIZE = 2   # TCN kernel_size=2 (two taps per dilated causal conv)
LANE = 128        # TPU lane width: channels are padded to a multiple of this


def _round_up(x, m):
    return ((x + m - 1) // m) * m


def _make_tcn_kernel(levels, n_rows, L, c_pad, bounds, dot_dtype):
    """Build the fused TCN kernel (one grid step = whole batch, all segments).

    Kernel refs:
      x_ref : (n_rows*L, c_pad) f32          embedded tokens, batch-major flattened rows
      w_ref : (levels*2*2, c_pad, c_pad)     per-(level, conv, tap) weights (dot dtype)
      b_ref : (levels*2, 1, c_pad) f32       per-(level, conv) biases
      o_ref : (S, n_rows, c_pad) f32         per-segment, per-batch-row time means

    `bounds` are the static segment boundaries (trace-time Python ints);
    segment s covers time steps [bounds[s], bounds[s+1]) and bounds[-1] == L.
    """
    M = n_rows * L
    S = len(bounds) - 1

    def kernel(x_ref, w_ref, b_ref, o_ref):
        x = x_ref[...]                                        # (M, c_pad) f32

        # Within-row time index t and distance from the segment start (hoisted,
        # reused by every level's causal mask and by the per-segment mean masks).
        m_idx = jax.lax.broadcasted_iota(jnp.int32, (M, 1), 0)
        if L & (L - 1) == 0:
            t_idx = jnp.bitwise_and(m_idx, L - 1)             # t = m mod L (L pow2)
        else:
            t_idx = jnp.remainder(m_idx, L)
        seg_start = jnp.full_like(t_idx, bounds[0])
        for b in bounds[1:-1]:                                # static interior boundaries
            seg_start = jnp.where(t_idx >= b, b, seg_start)
        dist = t_idx - seg_start                              # distance from segment start

        h = x                                                 # activations stay f32 (v5e-safe)
        for lvl in range(levels):                             # static unroll (levels is small)
            d = 2 ** lvl                                      # dilation
            keep = dist >= d                                  # causal mask, shared by both convs
            res = h                                           # identity residual (in_ch == out_ch)
            cur = h
            for conv in range(2):                             # two causal convs per TemporalBlock
                # Causal dilated shift: XLU roll + zero the first d steps of every
                # segment (roll wraparound across rows/segments lands only in the
                # masked region, so it never contaminates valid positions).
                if d < M:
                    shifted = jnp.where(keep, pltpu.roll(cur, shift=d, axis=0), 0.0)
                else:
                    shifted = jnp.zeros_like(cur)
                # Two accumulated MXU dots -- no VMEM staging / stores before the dot.
                widx = (lvl * 2 + conv) * 2
                y = (jnp.dot(shifted.astype(dot_dtype), w_ref[widx],
                             preferred_element_type=jnp.float32)
                     + jnp.dot(cur.astype(dot_dtype), w_ref[widx + 1],
                               preferred_element_type=jnp.float32)
                     + b_ref[lvl * 2 + conv])                 # (1, c_pad) f32 bias
                cur = jnp.maximum(y, 0.0)                     # ReLU (dropout = identity)
            h = jnp.maximum(cur + res, 0.0)                   # residual add + final ReLU (f32)

        # Per-segment time mean: mask (VPU) + sublane reduce (XLU), exact static 1/len.
        for s in range(S):
            lo, hi = bounds[s], bounds[s + 1]
            msk = (t_idx >= lo) & (t_idx < hi)                # (M, 1)
            hm = jnp.where(msk, h, 0.0)                       # (M, c_pad)
            seg_sum = jnp.sum(hm.reshape(n_rows, L, c_pad), axis=1)   # (n_rows, c_pad)
            o_ref[s] = seg_sum * (1.0 / float(hi - lo))

    return kernel


def tcn_segments(x2d, w_all, b_all, *, n_rows, L, bounds, levels):
    """x2d: (N*L, c_pad) f32; returns (S, N, c_pad) f32 per-segment time means."""
    M, c_pad = x2d.shape
    S = len(bounds) - 1
    kernel = _make_tcn_kernel(levels, n_rows, L, c_pad, bounds, w_all.dtype)
    # One grid step: all segments + whole batch in a single M = N*L slab.
    # TODO(synk): at production sizes (large N / L / embed_dim) tile the batch
    # (block rows a multiple of 8*L), mark that axis parallel / CORE_PARALLEL for
    # v7x's 2 TensorCores, and block w_all by level to fit v7x's 64 MiB VMEM.
    return pl.pallas_call(
        kernel,
        out_shape=jax.ShapeDtypeStruct((S, n_rows, c_pad), jnp.float32),
        grid_spec=pltpu.PrefetchScalarGridSpec(
            num_scalar_prefetch=0,
            grid=(1,),
            in_specs=[
                pl.BlockSpec((M, c_pad), lambda i: (0, 0)),
                pl.BlockSpec(w_all.shape, lambda i: (0, 0, 0)),   # resident weights
                pl.BlockSpec(b_all.shape, lambda i: (0, 0, 0)),   # resident biases
            ],
            out_specs=pl.BlockSpec((S, n_rows, c_pad), lambda i: (0, 0, 0)),
        ),
        compiler_params=pltpu.CompilerParams(
            dimension_semantics=("arbitrary",)),
    )(x2d, w_all, b_all)


def tcn_for_single_forward(texts, offsets_row, enc, W, B):
    """texts: (N, L) int32 tokens; offsets_row: python list of ints (== offsets[0] in torch)."""
    N, L = texts.shape
    C = enc.shape[1]
    levels = W.shape[0]
    c_pad = _round_up(C, LANE)                                # lane-dense channel dim

    bounds = [int(o) for o in offsets_row] + [L]              # static, as torch slices eagerly
    assert all(bounds[i] < bounds[i + 1] for i in range(len(bounds) - 1)), \
        "segments must be non-empty and increasing"
    S = len(offsets_row)

    # Pad channels once on the embedding table so the gather emits lane-dense
    # activations directly (no extra HBM pre-pass building a padded slab).
    enc_pad = jnp.pad(enc.astype(jnp.float32), ((0, 0), (0, c_pad - C)))
    emb = jnp.take(enc_pad, texts, axis=0)                    # (N, L, c_pad) embedding gather (glue)
    x2d = emb.reshape(N * L, c_pad)                           # batch-major flattened rows

    # bf16 dot operands on every generation (v5e/v6e/v7x MXU are bf16-native);
    # accumulation and everything outside the dots stays f32.
    dot_dtype = jnp.bfloat16
    # Per-(level, conv, tap) weights; zero-padded channels keep padded outputs at 0.
    w_all = jnp.pad(W, ((0, 0), (0, 0), (0, 0), (0, c_pad - C), (0, c_pad - C)))
    w_all = w_all.reshape(levels * 2 * KERNEL_SIZE, c_pad, c_pad).astype(dot_dtype)
    b_all = jnp.pad(B, ((0, 0), (0, 0), (0, 0), (0, c_pad - C)))
    b_all = b_all.reshape(levels * 2, 1, c_pad).astype(jnp.float32)

    out = tcn_segments(x2d, w_all, b_all, n_rows=N, L=L,
                       bounds=bounds, levels=levels)          # (S, N, c_pad)
    return out.reshape(S * N, c_pad)[:, :C]                   # torch.cat(y, dim=0) ordering


# ---------------- pure-JAX reference (for sanity check) ----------------
def _tcn_ref(x, W, B):
    levels = W.shape[0]
    h = x
    for lvl in range(levels):
        d = 2 ** lvl
        res = h
        cur = h
        for conv in range(2):
            if d < cur.shape[1]:
                shifted = jnp.concatenate(
                    [jnp.zeros((cur.shape[0], d, cur.shape[2]), cur.dtype),
                     cur[:, :-d]], axis=1)
            else:
                shifted = jnp.zeros_like(cur)
            y = (jnp.einsum('nlc,cd->nld', shifted, W[lvl, conv, 0])
                 + jnp.einsum('nlc,cd->nld', cur, W[lvl, conv, 1])
                 + B[lvl, conv, 0])
            cur = jnp.maximum(y, 0.0)
        h = jnp.maximum(cur + res, 0.0)
    return h.mean(axis=1)


def tcn_for_single_ref(texts, offsets_row, enc, W, B):
    emb = jnp.take(enc, texts, axis=0)
    L = emb.shape[1]
    bounds = list(offsets_row) + [L]
    ys = [_tcn_ref(emb[:, bounds[i]:bounds[i + 1]], W, B)
          for i in range(len(offsets_row))]
    return jnp.concatenate(ys, axis=0)


# ---------------- deterministic parameter init ----------------
def init_params(key, vocab_size, levels, embed_dim):
    k_enc, k_w, k_b = jax.random.split(key, 3)
    enc = 0.01 * jax.random.normal(k_enc, (vocab_size, embed_dim), jnp.float32)
    # effective (weight-norm folded) conv weights, N(0, 0.01) like the torch TCN init
    W = 0.01 * jax.random.normal(
        k_w, (levels, 2, KERNEL_SIZE, embed_dim, embed_dim), jnp.float32)
    B = 0.01 * jax.random.normal(k_b, (levels, 2, 1, embed_dim), jnp.float32)
    return enc, W, B


if __name__ == "__main__":
    vocab_size, levels, embed_dim = 50, 3, 32
    N, L = 2, 16

    key = jax.random.PRNGKey(0)
    k_params, k_tok = jax.random.split(key)
    enc, W, B = init_params(k_params, vocab_size, levels, embed_dim)

    texts = jax.random.randint(k_tok, (N, L), 0, vocab_size, dtype=jnp.int32)
    offsets = np.array([[0, 6, 11]], dtype=np.int32)   # torch `offsets`; we use offsets[0]
    offsets_row = [int(o) for o in offsets[0]]

    out = tcn_for_single_forward(texts, offsets_row, enc, W, B)
    out = jax.block_until_ready(out)

    ref = tcn_for_single_ref(texts, offsets_row, enc, W, B)
    np.testing.assert_allclose(np.asarray(out), np.asarray(ref), rtol=1e-2, atol=1e-3)
    assert out.shape == (len(offsets_row) * N, embed_dim)

    print("KERNEL_OK")
</pallas_src>

<mosaic_0001>
module attributes {stable_mosaic.version = 11 : i64} {
  func.func @kernel(%arg0: i32, %arg1: memref<32x128xf32, #tpu.memory_space<vmem>>, %arg2: memref<12x128x128xbf16, #tpu.memory_space<vmem>>, %arg3: memref<6x1x128xf32, #tpu.memory_space<vmem>>, %arg4: memref<3x2x128xf32, #tpu.memory_space<vmem>>) attributes {dimension_semantics = [#tpu.dimension_semantics<arbitrary>], iteration_bounds = array<i64: 1>, scalar_prefetch = 0 : i64, scratch_operands = 0 : i64, tpu.core_type = #tpu.core_type<tc>, window_params = [{pipeline_mode = #tpu.pipeline_mode<synchronous>, transform_indices = @transform_0, window_bounds = array<i64: 32, 128>}, {pipeline_mode = #tpu.pipeline_mode<synchronous>, transform_indices = @transform_1, window_bounds = array<i64: 12, 128, 128>}, {pipeline_mode = #tpu.pipeline_mode<synchronous>, transform_indices = @transform_2, window_bounds = array<i64: 6, 1, 128>}, {pipeline_mode = #tpu.pipeline_mode<synchronous>, transform_indices = @transform_3, window_bounds = array<i64: 3, 2, 128>}]} {
    %c0 = arith.constant 0 : index
    %c0_0 = arith.constant 0 : index
    %0 = vector.load %arg1[%c0, %c0_0] : memref<32x128xf32, #tpu.memory_space<vmem>>, vector<32x128xf32>
    %1 = tpu.iota {dimensions = array<i32: 0>} : vector<32x1xi32>
    %c15_i32 = arith.constant 15 : i32
    %2 = vector.broadcast %c15_i32 : i32 to vector<32x1xi32>
    %3 = arith.andi %1, %2 : vector<32x1xi32>
    %c0_i32 = arith.constant 0 : i32
    %4 = vector.broadcast %c0_i32 : i32 to vector<32x1xi32>
    %c6_i32 = arith.constant 6 : i32
    %5 = vector.broadcast %c6_i32 : i32 to vector<32x1xi32>
    %6 = arith.cmpi sge, %3, %5 : vector<32x1xi32>
    %c6_i32_1 = arith.constant 6 : i32
    %7 = vector.broadcast %c6_i32_1 : i32 to vector<32x1xi32>
    %8 = arith.select %6, %7, %4 : vector<32x1xi1>, vector<32x1xi32>
    %c11_i32 = arith.constant 11 : i32
    %9 = vector.broadcast %c11_i32 : i32 to vector<32x1xi32>
    %10 = arith.cmpi sge, %3, %9 : vector<32x1xi32>
    %c11_i32_2 = arith.constant 11 : i32
    %11 = vector.broadcast %c11_i32_2 : i32 to vector<32x1xi32>
    %12 = arith.select %10, %11, %8 : vector<32x1xi1>, vector<32x1xi32>
    %13 = arith.subi %3, %12 : vector<32x1xi32>
    %c1_i32 = arith.constant 1 : i32
    %14 = vector.broadcast %c1_i32 : i32 to vector<32x1xi32>
    %15 = arith.cmpi sge, %13, %14 : vector<32x1xi32>
    %c1_i32_3 = arith.constant 1 : i32
    %16 = tpu.dynamic_rotate %0 by %c1_i32_3 dim 0 : vector<32x128xf32>, i32 -> vector<32x128xf32>
    %cst = arith.constant 0.000000e+00 : f32
    %17 = vector.shape_cast %15 : vector<32x1xi1> to vector<32x1xi1>
    %18 = vector.broadcast %17 : vector<32x1xi1> to vector<32x128xi1>
    %19 = vector.broadcast %cst : f32 to vector<32x128xf32>
    %20 = arith.select %18, %16, %19 : vector<32x128xi1>, vector<32x128xf32>
    %21 = arith.truncf %20 : vector<32x128xf32> to vector<32x128xbf16>
    %c0_4 = arith.constant 0 : index
    %c0_5 = arith.constant 0 : index
    %c0_6 = arith.constant 0 : index
    %22 = vector.load %arg2[%c0_4, %c0_5, %c0_6] : memref<12x128x128xbf16, #tpu.memory_space<vmem>>, vector<1x128x128xbf16>
    %23 = vector.shape_cast %22 : vector<1x128x128xbf16> to vector<128x128xbf16>
    %cst_7 = arith.constant dense<0.000000e+00> : vector<32x128xf32>
    %24 = tpu.matmul %21, %23, %cst_7 {dimension_numbers = #tpu.dot_dimension_numbers<[1], [0], [0], [1], [0, 0, 1, 1], [], []>} : vector<32x128xbf16>, vector<128x128xbf16>, vector<32x128xf32> -> vector<32x128xf32>
    %25 = arith.truncf %0 : vector<32x128xf32> to vector<32x128xbf16>
    %c1 = arith.constant 1 : index
    %c0_8 = arith.constant 0 : index
    %c0_9 = arith.constant 0 : index
    %26 = vector.load %arg2[%c1, %c0_8, %c0_9] : memref<12x128x128xbf16, #tpu.memory_space<vmem>>, vector<1x128x128xbf16>
    %27 = vector.shape_cast %26 : vector<1x128x128xbf16> to vector<128x128xbf16>
    %cst_10 = arith.constant dense<0.000000e+00> : vector<32x128xf32>
    %28 = tpu.matmul %25, %27, %cst_10 {dimension_numbers = #tpu.dot_dimension_numbers<[1], [0], [0], [1], [0, 0, 1, 1], [], []>} : vector<32x128xbf16>, vector<128x128xbf16>, vector<32x128xf32> -> vector<32x128xf32>
    %29 = arith.addf %24, %28 : vector<32x128xf32>
    %c0_11 = arith.constant 0 : index
    %c0_12 = arith.constant 0 : index
    %c0_13 = arith.constant 0 : index
    %30 = vector.load %arg3[%c0_11, %c0_12, %c0_13] : memref<6x1x128xf32, #tpu.memory_space<vmem>>, vector<1x1x128xf32>
    %31 = vector.shape_cast %30 : vector<1x1x128xf32> to vector<1x128xf32>
    %32 = vector.broadcast %31 : vector<1x128xf32> to vector<32x128xf32>
    %33 = arith.addf %29, %32 : vector<32x128xf32>
    %cst_14 = arith.constant 0.000000e+00 : f32
    %34 = vector.broadcast %cst_14 : f32 to vector<32x128xf32>
    %35 = arith.maximumf %33, %34 : vector<32x128xf32>
    %c1_i32_15 = arith.constant 1 : i32
    %36 = tpu.dynamic_rotate %35 by %c1_i32_15 dim 0 : vector<32x128xf32>, i32 -> vector<32x128xf32>
    %cst_16 = arith.constant 0.000000e+00 : f32
    %37 = vector.shape_cast %15 : vector<32x1xi1> to vector<32x1xi1>
    %38 = vector.broadcast %37 : vector<32x1xi1> to vector<32x128xi1>
    %39 = vector.broadcast %cst_16 : f32 to vector<32x128xf32>
    %40 = arith.select %38, %36, %39 : vector<32x128xi1>, vector<32x128xf32>
    %41 = arith.truncf %40 : vector<32x128xf32> to vector<32x128xbf16>
    %c2 = arith.constant 2 : index
    %c0_17 = arith.constant 0 : index
    %c0_18 = arith.constant 0 : index
    %42 = vector.load %arg2[%c2, %c0_17, %c0_18] : memref<12x128x128xbf16, #tpu.memory_space<vmem>>, vector<1x128x128xbf16>
    %43 = vector.shape_cast %42 : vector<1x128x128xbf16> to vector<128x128xbf16>
    %cst_19 = arith.constant dense<0.000000e+00> : vector<32x128xf32>
    %44 = tpu.matmul %41, %43, %cst_19 {dimension_numbers = #tpu.dot_dimension_numbers<[1], [0], [0], [1], [0, 0, 1, 1], [], []>} : vector<32x128xbf16>, vector<128x128xbf16>, vector<32x128xf32> -> vector<32x128xf32>
    %45 = arith.truncf %35 : vector<32x128xf32> to vector<32x128xbf16>
    %c3 = arith.constant 3 : index
    %c0_20 = arith.constant 0 : index
    %c0_21 = arith.constant 0 : index
    %46 = vector.load %arg2[%c3, %c0_20, %c0_21] : memref<12x128x128xbf16, #tpu.memory_space<vmem>>, vector<1x128x128xbf16>
    %47 = vector.shape_cast %46 : vector<1x128x128xbf16> to vector<128x128xbf16>
    %cst_22 = arith.constant dense<0.000000e+00> : vector<32x128xf32>
    %48 = tpu.matmul %45, %47, %cst_22 {dimension_numbers = #tpu.dot_dimension_numbers<[1], [0], [0], [1], [0, 0, 1, 1], [], []>} : vector<32x128xbf16>, vector<128x128xbf16>, vector<32x128xf32> -> vector<32x128xf32>
    %49 = arith.addf %44, %48 : vector<32x128xf32>
    %c1_23 = arith.constant 1 : index
    %c0_24 = arith.constant 0 : index
    %c0_25 = arith.constant 0 : index
    %50 = vector.load %arg3[%c1_23, %c0_24, %c0_25] : memref<6x1x128xf32, #tpu.memory_space<vmem>>, vector<1x1x128xf32>
    %51 = vector.shape_cast %50 : vector<1x1x128xf32> to vector<1x128xf32>
    %52 = vector.broadcast %51 : vector<1x128xf32> to vector<32x128xf32>
    %53 = arith.addf %49, %52 : vector<32x128xf32>
    %cst_26 = arith.constant 0.000000e+00 : f32
    %54 = vector.broadcast %cst_26 : f32 to vector<32x128xf32>
    %55 = arith.maximumf %53, %54 : vector<32x128xf32>
    %56 = arith.addf %55, %0 : vector<32x128xf32>
    %cst_27 = arith.constant 0.000000e+00 : f32
    %57 = vector.broadcast %cst_27 : f32 to vector<32x128xf32>
    %58 = arith.maximumf %56, %57 : vector<32x128xf32>
    %c2_i32 = arith.constant 2 : i32
    %59 = vector.broadcast %c2_i32 : i32 to vector<32x1xi32>
    %60 = arith.cmpi sge, %13, %59 : vector<32x1xi32>
    %c2_i32_28 = arith.constant 2 : i32
    %61 = tpu.dynamic_rotate %58 by %c2_i32_28 dim 0 : vector<32x128xf32>, i32 -> vector<32x128xf32>
    %cst_29 = arith.constant 0.000000e+00 : f32
    %62 = vector.shape_cast %60 : vector<32x1xi1> to vector<32x1xi1>
    %63 = vector.broadcast %62 : vector<32x1xi1> to vector<32x128xi1>
    %64 = vector.broadcast %cst_29 : f32 to vector<32x128xf32>
    %65 = arith.select %63, %61, %64 : vector<32x128xi1>, vector<32x128xf32>
    %66 = arith.truncf %65 : vector<32x128xf32> to vector<32x128xbf16>
    %c4 = arith.constant 4 : index
    %c0_30 = arith.constant 0 : index
    %c0_31 = arith.constant 0 : index
    %67 = vector.load %arg2[%c4, %c0_30, %c0_31] : memref<12x128x128xbf16, #tpu.memory_space<vmem>>, vector<1x128x128xbf16>
    %68 = vector.shape_cast %67 : vector<1x128x128xbf16> to vector<128x128xbf16>
    %cst_32 = arith.constant dense<0.000000e+00> : vector<32x128xf32>
    %69 = tpu.matmul %66, %68, %cst_32 {dimension_numbers = #tpu.dot_dimension_numbers<[1], [0], [0], [1], [0, 0, 1, 1], [], []>} : vector<32x128xbf16>, vector<128x128xbf16>, vector<32x128xf32> -> vector<32x128xf32>
    %70 = arith.truncf %58 : vector<32x128xf32> to vector<32x128xbf16>
    %c5 = arith.constant 5 : index
    %c0_33 = arith.constant 0 : index
    %c0_34 = arith.constant 0 : index
    %71 = vector.load %arg2[%c5, %c0_33, %c0_34] : memref<12x128x128xbf16, #tpu.memory_space<vmem>>, vector<1x128x128xbf16>
    %72 = vector.shape_cast %71 : vector<1x128x128xbf16> to vector<128x128xbf16>
    %cst_35 = arith.constant dense<0.000000e+00> : vector<32x128xf32>
    %73 = tpu.matmul %70, %72, %cst_35 {dimension_numbers = #tpu.dot_dimension_numbers<[1], [0], [0], [1], [0, 0, 1, 1], [], []>} : vector<32x128xbf16>, vector<128x128xbf16>, vector<32x128xf32> -> vector<32x128xf32>
    %74 = arith.addf %69, %73 : vector<32x128xf32>
    %c2_36 = arith.constant 2 : index
    %c0_37 = arith.constant 0 : index
    %c0_38 = arith.constant 0 : index
    %75 = vector.load %arg3[%c2_36, %c0_37, %c0_38] : memref<6x1x128xf32, #tpu.memory_space<vmem>>, vector<1x1x128xf32>
    %76 = vector.shape_cast %75 : vector<1x1x128xf32> to vector<1x128xf32>
    %77 = vector.broadcast %76 : vector<1x128xf32> to vector<32x128xf32>
    %78 = arith.addf %74, %77 : vector<32x128xf32>
    %cst_39 = arith.constant 0.000000e+00 : f32
    %79 = vector.broadcast %cst_39 : f32 to vector<32x128xf32>
    %80 = arith.maximumf %78, %79 : vector<32x128xf32>
    %c2_i32_40 = arith.constant 2 : i32
    %81 = tpu.dynamic_rotate %80 by %c2_i32_40 dim 0 : vector<32x128xf32>, i32 -> vector<32x128xf32>
    %cst_41 = arith.constant 0.000000e+00 : f32
    %82 = vector.shape_cast %60 : vector<32x1xi1> to vector<32x1xi1>
    %83 = vector.broadcast %82 : vector<32x1xi1> to vector<32x128xi1>
    %84 = vector.broadcast %cst_41 : f32 to vector<32x128xf32>
    %85 = arith.select %83, %81, %84 : vector<32x128xi1>, vector<32x128xf32>
    %86 = arith.truncf %85 : vector<32x128xf32> to vector<32x128xbf16>
    %c6 = arith.constant 6 : index
    %c0_42 = arith.constant 0 : index
    %c0_43 = arith.constant 0 : index
    %87 = vector.load %arg2[%c6, %c0_42, %c0_43] : memref<12x128x128xbf16, #tpu.memory_space<vmem>>, vector<1x128x128xbf16>
    %88 = vector.shape_cast %87 : vector<1x128x128xbf16> to vector<128x128xbf16>
    %cst_44 = arith.constant dense<0.000000e+00> : vector<32x128xf32>
    %89 = tpu.matmul %86, %88, %cst_44 {dimension_numbers = #tpu.dot_dimension_numbers<[1], [0], [0], [1], [0, 0, 1, 1], [], []>} : vector<32x128xbf16>, vector<128x128xbf16>, vector<32x128xf32> -> vector<32x128xf32>
    %90 = arith.truncf %80 : vector<32x128xf32> to vector<32x128xbf16>
    %c7 = arith.constant 7 : index
    %c0_45 = arith.constant 0 : index
    %c0_46 = arith.constant 0 : index
    %91 = vector.load %arg2[%c7, %c0_45, %c0_46] : memref<12x128x128xbf16, #tpu.memory_space<vmem>>, vector<1x128x128xbf16>
    %92 = vector.shape_cast %91 : vector<1x128x128xbf16> to vector<128x128xbf16>
    %cst_47 = arith.constant dense<0.000000e+00> : vector<32x128xf32>
    %93 = tpu.matmul %90, %92, %cst_47 {dimension_numbers = #tpu.dot_dimension_numbers<[1], [0], [0], [1], [0, 0, 1, 1], [], []>} : vector<32x128xbf16>, vector<128x128xbf16>, vector<32x128xf32> -> vector<32x128xf32>
    %94 = arith.addf %89, %93 : vector<32x128xf32>
    %c3_48 = arith.constant 3 : index
    %c0_49 = arith.constant 0 : index
    %c0_50 = arith.constant 0 : index
    %95 = vector.load %arg3[%c3_48, %c0_49, %c0_50] : memref<6x1x128xf32, #tpu.memory_space<vmem>>, vector<1x1x128xf32>
    %96 = vector.shape_cast %95 : vector<1x1x128xf32> to vector<1x128xf32>
    %97 = vector.broadcast %96 : vector<1x128xf32> to vector<32x128xf32>
    %98 = arith.addf %94, %97 : vector<32x128xf32>
    %cst_51 = arith.constant 0.000000e+00 : f32
    %99 = vector.broadcast %cst_51 : f32 to vector<32x128xf32>
    %100 = arith.maximumf %98, %99 : vector<32x128xf32>
    %101 = arith.addf %100, %58 : vector<32x128xf32>
    %cst_52 = arith.constant 0.000000e+00 : f32
    %102 = vector.broadcast %cst_52 : f32 to vector<32x128xf32>
    %103 = arith.maximumf %101, %102 : vector<32x128xf32>
    %c4_i32 = arith.constant 4 : i32
    %104 = vector.broadcast %c4_i32 : i32 to vector<32x1xi32>
    %105 = arith.cmpi sge, %13, %104 : vector<32x1xi32>
    %c4_i32_53 = arith.constant 4 : i32
    %106 = tpu.dynamic_rotate %103 by %c4_i32_53 dim 0 : vector<32x128xf32>, i32 -> vector<32x128xf32>
    %cst_54 = arith.constant 0.000000e+00 : f32
    %107 = vector.shape_cast %105 : vector<32x1xi1> to vector<32x1xi1>
    %108 = vector.broadcast %107 : vector<32x1xi1> to vector<32x128xi1>
    %109 = vector.broadcast %cst_54 : f32 to vector<32x128xf32>
    %110 = arith.select %108, %106, %109 : vector<32x128xi1>, vector<32x128xf32>
    %111 = arith.truncf %110 : vector<32x128xf32> to vector<32x128xbf16>
    %c8 = arith.constant 8 : index
    %c0_55 = arith.constant 0 : index
    %c0_56 = arith.constant 0 : index
    %112 = vector.load %arg2[%c8, %c0_55, %c0_56] : memref<12x128x128xbf16, #tpu.memory_space<vmem>>, vector<1x128x128xbf16>
    %113 = vector.shape_cast %112 : vector<1x128x128xbf16> to vector<128x128xbf16>
    %cst_57 = arith.constant dense<0.000000e+00> : vector<32x128xf32>
    %114 = tpu.matmul %111, %113, %cst_57 {dimension_numbers = #tpu.dot_dimension_numbers<[1], [0], [0], [1], [0, 0, 1, 1], [], []>} : vector<32x128xbf16>, vector<128x128xbf16>, vector<32x128xf32> -> vector<32x128xf32>
    %115 = arith.truncf %103 : vector<32x128xf32> to vector<32x128xbf16>
    %c9 = arith.constant 9 : index
    %c0_58 = arith.constant 0 : index
    %c0_59 = arith.constant 0 : index
    %116 = vector.load %arg2[%c9, %c0_58, %c0_59] : memref<12x128x128xbf16, #tpu.memory_space<vmem>>, vector<1x128x128xbf16>
    %117 = vector.shape_cast %116 : vector<1x128x128xbf16> to vector<128x128xbf16>
    %cst_60 = arith.constant dense<0.000000e+00> : vector<32x128xf32>
    %118 = tpu.matmul %115, %117, %cst_60 {dimension_numbers = #tpu.dot_dimension_numbers<[1], [0], [0], [1], [0, 0, 1, 1], [], []>} : vector<32x128xbf16>, vector<128x128xbf16>, vector<32x128xf32> -> vector<32x128xf32>
    %119 = arith.addf %114, %118 : vector<32x128xf32>
    %c4_61 = arith.constant 4 : index
    %c0_62 = arith.constant 0 : index
    %c0_63 = arith.constant 0 : index
    %120 = vector.load %arg3[%c4_61, %c0_62, %c0_63] : memref<6x1x128xf32, #tpu.memory_space<vmem>>, vector<1x1x128xf32>
    %121 = vector.shape_cast %120 : vector<1x1x128xf32> to vector<1x128xf32>
    %122 = vector.broadcast %121 : vector<1x128xf32> to vector<32x128xf32>
    %123 = arith.addf %119, %122 : vector<32x128xf32>
    %cst_64 = arith.constant 0.000000e+00 : f32
    %124 = vector.broadcast %cst_64 : f32 to vector<32x128xf32>
    %125 = arith.maximumf %123, %124 : vector<32x128xf32>
    %c4_i32_65 = arith.constant 4 : i32
    %126 = tpu.dynamic_rotate %125 by %c4_i32_65 dim 0 : vector<32x128xf32>, i32 -> vector<32x128xf32>
    %cst_66 = arith.constant 0.000000e+00 : f32
    %127 = vector.shape_cast %105 : vector<32x1xi1> to vector<32x1xi1>
    %128 = vector.broadcast %127 : vector<32x1xi1> to vector<32x128xi1>
    %129 = vector.broadcast %cst_66 : f32 to vector<32x128xf32>
    %130 = arith.select %128, %126, %129 : vector<32x128xi1>, vector<32x128xf32>
    %131 = arith.truncf %130 : vector<32x128xf32> to vector<32x128xbf16>
    %c10 = arith.constant 10 : index
    %c0_67 = arith.constant 0 : index
    %c0_68 = arith.constant 0 : index
    %132 = vector.load %arg2[%c10, %c0_67, %c0_68] : memref<12x128x128xbf16, #tpu.memory_space<vmem>>, vector<1x128x128xbf16>
    %133 = vector.shape_cast %132 : vector<1x128x128xbf16> to vector<128x128xbf16>
    %cst_69 = arith.constant dense<0.000000e+00> : vector<32x128xf32>
    %134 = tpu.matmul %131, %133, %cst_69 {dimension_numbers = #tpu.dot_dimension_numbers<[1], [0], [0], [1], [0, 0, 1, 1], [], []>} : vector<32x128xbf16>, vector<128x128xbf16>, vector<32x128xf32> -> vector<32x128xf32>
    %135 = arith.truncf %125 : vector<32x128xf32> to vector<32x128xbf16>
    %c11 = arith.constant 11 : index
    %c0_70 = arith.constant 0 : index
    %c0_71 = arith.constant 0 : index
    %136 = vector.load %arg2[%c11, %c0_70, %c0_71] : memref<12x128x128xbf16, #tpu.memory_space<vmem>>, vector<1x128x128xbf16>
    %137 = vector.shape_cast %136 : vector<1x128x128xbf16> to vector<128x128xbf16>
    %cst_72 = arith.constant dense<0.000000e+00> : vector<32x128xf32>
    %138 = tpu.matmul %135, %137, %cst_72 {dimension_numbers = #tpu.dot_dimension_numbers<[1], [0], [0], [1], [0, 0, 1, 1], [], []>} : vector<32x128xbf16>, vector<128x128xbf16>, vector<32x128xf32> -> vector<32x128xf32>
    %139 = arith.addf %134, %138 : vector<32x128xf32>
    %c5_73 = arith.constant 5 : index
    %c0_74 = arith.constant 0 : index
    %c0_75 = arith.constant 0 : index
    %140 = vector.load %arg3[%c5_73, %c0_74, %c0_75] : memref<6x1x128xf32, #tpu.memory_space<vmem>>, vector<1x1x128xf32>
    %141 = vector.shape_cast %140 : vector<1x1x128xf32> to vector<1x128xf32>
    %142 = vector.broadcast %141 : vector<1x128xf32> to vector<32x128xf32>
    %143 = arith.addf %139, %142 : vector<32x128xf32>
    %cst_76 = arith.constant 0.000000e+00 : f32
    %144 = vector.broadcast %cst_76 : f32 to vector<32x128xf32>
    %145 = arith.maximumf %143, %144 : vector<32x128xf32>
    %146 = arith.addf %145, %103 : vector<32x128xf32>
    %cst_77 = arith.constant 0.000000e+00 : f32
    %147 = vector.broadcast %cst_77 : f32 to vector<32x128xf32>
    %148 = arith.maximumf %146, %147 : vector<32x128xf32>
    %c0_i32_78 = arith.constant 0 : i32
    %149 = vector.broadcast %c0_i32_78 : i32 to vector<32x1xi32>
    %150 = arith.cmpi sge, %3, %149 : vector<32x1xi32>
    %c6_i32_79 = arith.constant 6 : i32
    %151 = vector.broadcast %c6_i32_79 : i32 to vector<32x1xi32>
    %152 = arith.cmpi slt, %3, %151 : vector<32x1xi32>
    %153 = arith.andi %150, %152 : vector<32x1xi1>
    %cst_80 = arith.constant 0.000000e+00 : f32
    %154 = vector.shape_cast %153 : vector<32x1xi1> to vector<32x1xi1>
    %155 = vector.broadcast %154 : vector<32x1xi1> to vector<32x128xi1>
    %156 = vector.broadcast %cst_80 : f32 to vector<32x128xf32>
    %157 = arith.select %155, %148, %156 : vector<32x128xi1>, vector<32x128xf32>
    %158 = vector.shape_cast %157 : vector<32x128xf32> to vector<2x16x128xf32>
    %cst_81 = arith.constant dense<0.000000e+00> : vector<2x128xf32>
    %159 = vector.multi_reduction <add>, %158, %cst_81 [1] : vector<2x16x128xf32> to vector<2x128xf32>
    %cst_82 = arith.constant 0.166666672 : f32
    %160 = vector.broadcast %cst_82 : f32 to vector<2x128xf32>
    %161 = arith.mulf %159, %160 : vector<2x128xf32>
    %c0_83 = arith.constant 0 : index
    %c0_84 = arith.constant 0 : index
    %c0_85 = arith.constant 0 : index
    %162 = vector.load %arg4[%c0_83, %c0_84, %c0_85] : memref<3x2x128xf32, #tpu.memory_space<vmem>>, vector<1x2x128xf32>
    %163 = vector.shape_cast %162 : vector<1x2x128xf32> to vector<2x128xf32>
    %164 = vector.shape_cast %161 : vector<2x128xf32> to vector<1x2x128xf32>
    tpu.vector_store %arg4[%c0_83, %c0_84, %c0_85], %164 {strides = array<i32>} : memref<3x2x128xf32, #tpu.memory_space<vmem>>, vector<1x2x128xf32>,
    %c6_i32_86 = arith.constant 6 : i32
    %165 = vector.broadcast %c6_i32_86 : i32 to vector<32x1xi32>
    %166 = arith.cmpi sge, %3, %165 : vector<32x1xi32>
    %c11_i32_87 = arith.constant 11 : i32
    %167 = vector.broadcast %c11_i32_87 : i32 to vector<32x1xi32>
    %168 = arith.cmpi slt, %3, %167 : vector<32x1xi32>
    %169 = arith.andi %166, %168 : vector<32x1xi1>
    %cst_88 = arith.constant 0.000000e+00 : f32
    %170 = vector.shape_cast %169 : vector<32x1xi1> to vector<32x1xi1>
    %171 = vector.broadcast %170 : vector<32x1xi1> to vector<32x128xi1>
    %172 = vector.broadcast %cst_88 : f32 to vector<32x128xf32>
    %173 = arith.select %171, %148, %172 : vector<32x128xi1>, vector<32x128xf32>
    %174 = vector.shape_cast %173 : vector<32x128xf32> to vector<2x16x128xf32>
    %cst_89 = arith.constant dense<0.000000e+00> : vector<2x128xf32>
    %175 = vector.multi_reduction <add>, %174, %cst_89 [1] : vector<2x16x128xf32> to vector<2x128xf32>
    %cst_90 = arith.constant 2.000000e-01 : f32
    %176 = vector.broadcast %cst_90 : f32 to vector<2x128xf32>
    %177 = arith.mulf %175, %176 : vector<2x128xf32>
    %c1_91 = arith.constant 1 : index
    %c0_92 = arith.constant 0 : index
    %c0_93 = arith.constant 0 : index
    %178 = vector.load %arg4[%c1_91, %c0_92, %c0_93] : memref<3x2x128xf32, #tpu.memory_space<vmem>>, vector<1x2x128xf32>
    %179 = vector.shape_cast %178 : vector<1x2x128xf32> to vector<2x128xf32>
    %180 = vector.shape_cast %177 : vector<2x128xf32> to vector<1x2x128xf32>
    tpu.vector_store %arg4[%c1_91, %c0_92, %c0_93], %180 {strides = array<i32>} : memref<3x2x128xf32, #tpu.memory_space<vmem>>, vector<1x2x128xf32>,
    %c11_i32_94 = arith.constant 11 : i32
    %181 = vector.broadcast %c11_i32_94 : i32 to vector<32x1xi32>
    %182 = arith.cmpi sge, %3, %181 : vector<32x1xi32>
    %c16_i32 = arith.constant 16 : i32
    %183 = vector.broadcast %c16_i32 : i32 to vector<32x1xi32>
    %184 = arith.cmpi slt, %3, %183 : vector<32x1xi32>
    %185 = arith.andi %182, %184 : vector<32x1xi1>
    %cst_95 = arith.constant 0.000000e+00 : f32
    %186 = vector.shape_cast %185 : vector<32x1xi1> to vector<32x1xi1>
    %187 = vector.broadcast %186 : vector<32x1xi1> to vector<32x128xi1>
    %188 = vector.broadcast %cst_95 : f32 to vector<32x128xf32>
    %189 = arith.select %187, %148, %188 : vector<32x128xi1>, vector<32x128xf32>
    %190 = vector.shape_cast %189 : vector<32x128xf32> to vector<2x16x128xf32>
    %cst_96 = arith.constant dense<0.000000e+00> : vector<2x128xf32>
    %191 = vector.multi_reduction <add>, %190, %cst_96 [1] : vector<2x16x128xf32> to vector<2x128xf32>
    %cst_97 = arith.constant 2.000000e-01 : f32
    %192 = vector.broadcast %cst_97 : f32 to vector<2x128xf32>
    %193 = arith.mulf %191, %192 : vector<2x128xf32>
    %c2_98 = arith.constant 2 : index
    %c0_99 = arith.constant 0 : index
    %c0_100 = arith.constant 0 : index
    %194 = vector.load %arg4[%c2_98, %c0_99, %c0_100] : memref<3x2x128xf32, #tpu.memory_space<vmem>>, vector<1x2x128xf32>
    %195 = vector.shape_cast %194 : vector<1x2x128xf32> to vector<2x128xf32>
    %196 = vector.shape_cast %193 : vector<2x128xf32> to vector<1x2x128xf32>
    tpu.vector_store %arg4[%c2_98, %c0_99, %c0_100], %196 {strides = array<i32>} : memref<3x2x128xf32, #tpu.memory_space<vmem>>, vector<1x2x128xf32>,
    return
  }
  func.func @transform_0(%arg0: i32) -> (i32, i32) {
    %c0_i32 = arith.constant 0 : i32
    %c0_i32_0 = arith.constant 0 : i32
    %c0_i32_1 = arith.constant 0 : i32
    return %c0_i32, %c0_i32_0 : i32, i32
  }
  func.func @transform_1(%arg0: i32) -> (i32, i32, i32) {
    %c0_i32 = arith.constant 0 : i32
    %c0_i32_0 = arith.constant 0 : i32
    %c0_i32_1 = arith.constant 0 : i32
    %c0_i32_2 = arith.constant 0 : i32
    return %c0_i32, %c0_i32_0, %c0_i32_1 : i32, i32, i32
  }
  func.func @transform_2(%arg0: i32) -> (i32, i32, i32) {
    %c0_i32 = arith.constant 0 : i32
    %c0_i32_0 = arith.constant 0 : i32
    %c0_i32_1 = arith.constant 0 : i32
    %c0_i32_2 = arith.constant 0 : i32
    return %c0_i32, %c0_i32_0, %c0_i32_1 : i32, i32, i32
  }
  func.func @transform_3(%arg0: i32) -> (i32, i32, i32) {
    %c0_i32 = arith.constant 0 : i32
    %c0_i32_0 = arith.constant 0 : i32
    %c0_i32_1 = arith.constant 0 : i32
    %c0_i32_2 = arith.constant 0 : i32
    return %c0_i32, %c0_i32_0, %c0_i32_1 : i32, i32, i32
  }
}

</mosaic_0001>

<bundles_post_ra>
// kernel: tpu_custom_call.1
= control target key start
LH: loop header
LB: loop body
LE: loop exit
PB: predicated region body
PF: predicated region fallthrough
CT: control target
= control target key end

     0   :  { %8 = vsyncpa [#allocation3], 0  ;;  %s2863_s0 = inlined_call_operand.hbm [shape: f32[32,128], index: 0, kind: input, shape index: {}]   ;;  %s2864_s1 = inlined_call_operand.hbm [shape: bf16[12,128,128], index: 1, kind: input, shape index: {}]   ;;  %s2865_s2 = inlined_call_operand.vmem [shape: f32[6,1,128], index: 2, kind: input, shape index: {}]   ;;  %s2866_s3 = inlined_call_operand.hbm [shape: f32[3,2,128], index: 3, kind: output, shape index: {}]  }
   0x1   :  { %9 = vsyncpa [#allocation6], 0 }
   0x2   :  { %10 = vsyncpa [#allocation4], 0  ;;  %s2552_s12 = smov [#allocation2]   ;;  %s2480_s16 = scalar_lea.hbm %s2863_s0, 512 }
   0x3   :  { %s16_s13 = sshll.u32 %s2552_s12, 4  ;;  %p2481_p0 = scmp.ne.s32.totalorder %s2863_s0, %s2480_s16  ;;  %s17_s13 = int_to_ptr.vmem [resolvable:$true] %s16_s13 }
   0x4   :  { %p2484_p1 = scmp.lt.u32.totalorder %s2480_s16, %s2863_s0 }
   0x6   :  { %p2486_p2 = pnand %p2484_p1, %p2481_p0 }
   0x8   :  { %2489 = shalt.err (!%p2486_p2)
}
   0x9   :  { %s2490_s21 = scalar_lea.vmem %s17_s13, 512  ;;  %p2495_p4 = scmp.lt.s32.totalorder %s17_s13, %s17_s13 }
   0xa   :  { %p2491_p3 = scmp.ne.s32.totalorder %s17_s13, %s2490_s21  ;;  %p2496_p5 = scmp.lt.s32.totalorder %s2490_s21, %s2490_s21 }
   0xc   :  { %p2497_p6 = por %p2496_p5, %p2495_p4 }
   0xe   :  { %p2498_p7 = pnand %p2497_p6, %p2491_p3 }
  0x10   :  { %2501 = shalt.err (!%p2498_p7)
}
  0x11   :  { %s2553_s22 = smov 128   ;;  %s2554_s23 = smov 8  }
  0x12   :  { %22 = dma.hbm_to_vmem [thread:$0]  %s2863_s0, 512, %s17_s13, [#allocation3], %s2553_s22, %s2553_s22, %s2554_s23  }
  0x13   :  { %s2555_s26 = smov [#allocation5]   ;;  %s2502_s30 = scalar_lea.hbm %s2864_s1, 12288 }
  0x14   :  { %s28_s27 = sshll.u32 %s2555_s26, 4  ;;  %p2503_p8 = scmp.ne.s32.totalorder %s2864_s1, %s2502_s30  ;;  %s29_s27 = int_to_ptr.vmem [resolvable:$true] %s28_s27 }
  0x15   :  { %p2506_p9 = scmp.lt.u32.totalorder %s2502_s30, %s2864_s1 }
  0x17   :  { %p2508_p10 = pnand %p2506_p9, %p2503_p8 }
  0x19   :  { %2511 = shalt.err (!%p2508_p10)
}
  0x1a   :  { %s2512_s8 = scalar_lea.vmem %s29_s27, 12288  ;;  %p2517_p12 = scmp.lt.s32.totalorder %s29_s27, %s29_s27 }
  0x1b   :  { %p2513_p11 = scmp.ne.s32.totalorder %s29_s27, %s2512_s8  ;;  %p2518_p13 = scmp.lt.s32.totalorder %s2512_s8, %s2512_s8 }
  0x1d   :  { %p2519_p0 = por %p2518_p13, %p2517_p12 }
  0x1f   :  { %p2520_p1 = pnand %p2519_p0, %p2513_p11 }
  0x21   :  { %2523 = shalt.err (!%p2520_p1)
}
  0x22   :  { %s2556_s0 = smov 64   ;;  %s2557_s9 = smov 4  }
  0x23   :  { %34 = dma.hbm_to_vmem [thread:$0]  %s2864_s1, 12288, %s29_s27, [#allocation6], %s2556_s0, %s2556_s0, %s2557_s9  }
  0x24   :  { %2546 = dma.done.wait [#allocation3], 512  }
  0x25   :  { %2547 = vsyncadd [#allocation3], 4294966784 }
  0x26   :  { %2548 = dma.done.wait [#allocation6], 12288  }
  0x27   :  { %2549 = vsyncadd [#allocation6], 4294955008  ;;  %v48_v0 = vlaneseq  ;;  %v2384_v2 = vld [vmem:[#allocation5 + $0x40] sm:$0xff]   ;;  %v2385_v3 = vld [vmem:[#allocation5 + $0x48] sm:$0xff]   ;;  %v2558_v17 = vmov 0   ;;  %v2559_v19 = vmov 6  }
  0x28   :  { %2109 = vmatprep.subr.bf16.mxu0 %v2384_v2  ;;  %v2386_v5 = vld [vmem:[#allocation5 + $0x50] sm:$0xff]   ;;  %v2387_v9 = vld [vmem:[#allocation5 + $0x58] sm:$0xff]   ;;  %v2617_v11 = vld [vmem:[#allocation2] sm:$0xff] }
  0x29   :  { %v2607_v1 = vshrl.u32 %v48_v0, 7  ;;  %2110 = vmatpush3.bf16.msra.mxu0 %v2384_v2  ;;  %v2619_v12 = vld [vmem:[#allocation2 + $0x8] sm:$0xff]  ;;  %v2388_v16 = vld [vmem:[#allocation5 + $0x60] sm:$0xff]   ;;  %v2390_v24 = vld [vmem:[#allocation5 + $0x70] sm:$0xff]   ;;  %v81_v30 = vrot.slane %v2617_v11, 7 }
  0x2a   :  { %2111 = vmatprep.subr.bf16.mxu0 %v2385_v3  ;;  %v120_v13 = vpack.c.bf16 %v2619_v12, %v2617_v11  ;;  %v2389_v22 = vld [vmem:[#allocation5 + $0x68] sm:$0xff]   ;;  %v2400_v27 = vld [vmem:[#allocation5 + $0xc0] sm:$0xff]   ;;  %v2647_v29 = vld [vmem:[#allocation2 + $0x10] sm:$0xff]  ;;  %v82_v33 = vrot.slane %v2619_v12, 7 }
  0x2b   :  { %v50_v4 = vadd.s32 8, %v2607_v1  ;;  %v2611_v6 = vand.u32 15, %v2607_v1  ;;  %v51_v7 = vadd.s32 16, %v2607_v1  ;;  %v52_v10 = vadd.s32 24, %v2607_v1  ;;  %v2401_v28 = vld [vmem:[#allocation5 + $0xc8] sm:$0xff]   ;;  %2149 = vmatprep.subr.bf16.mxu1 %v2400_v27  ;;  %v2651_v31 = vld [vmem:[#allocation2 + $0x18] sm:$0xff] }
  0x2c   :  { %2125 = vmatprep.mubr.bf16.mxu0 %v120_v13  ;;  %vm85_vm4 = vcmp.lt.s32.totalorder %v2607_v1, 1  ;;  %2150 = vmatpush3.bf16.msra.mxu1 %v2400_v27  ;;  %v2391_v32 = vld [vmem:[#allocation5 + $0x78] sm:$0xff]   ;;  %v2402_v34 = vld [vmem:[#allocation5 + $0xd0] sm:$0xff]   ;;  %v83_v35 = vrot.slane %v2647_v29, 7  ;;  %v84_v36 = vrot.slane %v2651_v31, 7  ;;  %v2392_v39 = vld [vmem:[#allocation5] sm:$0xff]   ;;  %v121_v43 = vpack.c.bf16 %v2651_v31, %v2647_v29 }
  0x2d   :  { %v2614_v8 = vand.u32 15, %v50_v4  ;;  %2112 = vmatpush3.bf16.msra.mxu0 %v2385_v3  ;;  %vm57_vm0 = vcmp.ge.s32.totalorder %v2611_v6, 6  ;;  %v2625_v14 = vand.u32 15, %v51_v7  ;;  %v2627_v15 = vand.u32 15, %v52_v10  ;;  %2151 = vmatprep.subr.bf16.mxu1 %v2401_v28  ;;  %v2403_v38 = vld [vmem:[#allocation5 + $0xd8] sm:$0xff]   ;;  %v2404_v42 = vld [vmem:[#allocation5 + $0xe0] sm:$0xff]  }
  0x2e   :  { %2113 = vmatprep.subr.bf16.mxu0 %v2386_v5  ;;  %v61_v18 = vsel %vm57_vm0, 6, %v2558_v17  ;;  %v88_v40 = vsel %vm85_vm4, %v81_v30, %v82_v33  ;;  %v89_v41 = vsel %vm85_vm4, %v84_v36, %v81_v30  ;;  %v2393_v44 = vld [vmem:[#allocation5 + $0x8] sm:$0xff]   ;;  %v2394_v47 = vld [vmem:[#allocation5 + $0x10] sm:$0xff]   ;;  %v2395_v48 = vld [vmem:[#allocation5 + $0x18] sm:$0xff]   ;;  %v86_v56 = vsel %vm85_vm4, %v83_v35, %v84_v36 }
  0x2f   :  { %vm66_vm1 = vcmp.ge.s32.totalorder %v2614_v8, 11  ;;  %vm59_vm2 = vcmp.ge.s32.totalorder %v2625_v14, 6  ;;  %vm68_vm3 = vcmp.ge.s32.totalorder %v2627_v15, 11  ;;  %v2636_v21 = vsub.s32 %v2611_v6, %v61_v18  ;;  %v2405_v46 = vld [vmem:[#allocation5 + $0xe8] sm:$0xff]   ;;  %v2396_v51 = vld [vmem:[#allocation5 + $0x20] sm:$0xff]   ;;  %v2398_v53 = vld [vmem:[#allocation5 + $0x30] sm:$0xff]  }
  0x30   :  { %v70_v20 = vsel %vm66_vm1, 11, %v2559_v19  ;;  %v63_v25 = vsel %vm59_vm2, 6, %v2558_v17  ;;  %v72_v26 = vsel %vm68_vm3, 11, %v2559_v19  ;;  %2152 = vmatpush3.bf16.msra.mxu1 %v2401_v28  ;;  %v1863_v45 = vpack.c.bf16 %v88_v40, %v89_v41  ;;  %v2397_v52 = vld [vmem:[#allocation5 + $0x28] sm:$0xff]   ;;  %v2399_v54 = vld [vmem:[#allocation5 + $0x38] sm:$0xff]   ;;  %v2406_v59 = vld [vmem:[#allocation5 + $0xf0] sm:$0xff]  }
  0x31   :  { %2114 = vmatpush3.bf16.msra.mxu0 %v2386_v5  ;;  %v2639_v23 = vsub.s32 %v2614_v8, %v70_v20  ;;  %vm77_vm5 = vcmp.ge.s32.totalorder %v2636_v21, 1  ;;  %2153 = vmatprep.subr.bf16.mxu1 %v2402_v34  ;;  %v2671_v49 = vsub.s32 %v2625_v14, %v63_v25  ;;  %v2674_v50 = vsub.s32 %v2627_v15, %v72_v26  ;;  %v2407_v60 = vld [vmem:[#allocation5 + $0xf8] sm:$0xff]   ;;  %v2408_v61 = vld [vmem:[#allocation5 + $0x80] sm:$0xff]   ;;  %v2417_v63 = vld [vmem:[#allocation5 + $0x148] sm:$0xff]  }
  0x32   :  { %2115 = vmatprep.subr.bf16.mxu0 %v2387_v9  ;;  %v87_v57 = vsel %vm85_vm4, %v82_v33, %v83_v35  ;;  %v2416_v62 = vld [vmem:[#allocation5 + $0x140] sm:$0xff]   ;;  %v2418_v0 = vld [vmem:[#allocation5 + $0x150] sm:$0xff]   ;;  %v2419_v2 = vld [vmem:[#allocation5 + $0x158] sm:$0xff]   ;;  %vm624_vm11 = vcmp.lt.s32.totalorder %v2607_v1, 2  ;;  %vm616_vm12 = vcmp.ge.s32.totalorder %v2636_v21, 2 }
  0x33   :  { %vm78_vm6 = vcmp.ge.s32.totalorder %v2639_v23, 1  ;;  %vm79_vm8 = vcmp.ge.s32.totalorder %v2671_v49, 1  ;;  %vm80_vm9 = vcmp.ge.s32.totalorder %v2674_v50, 1  ;;  %v1866_v58 = vpack.c.bf16 %v86_v56, %v87_v57  ;;  %v2420_v3 = vld [vmem:[#allocation5 + $0x160] sm:$0xff]   ;;  %v2409_v35 = vld [vmem:[#allocation5 + $0x88] sm:$0xff]   ;;  %v2410_v41 = vld [vmem:[#allocation5 + $0x90] sm:$0xff]  }
  0x34   :  { %vm2658_vm7 = vmpackc.low %vm78_vm6, %vm77_vm5  ;;  %2154 = vmatpush3.bf16.msra.mxu1 %v2402_v34  ;;  %v1868_v4 = vld [vmem:[%s2865_s2] ss:$0 sm:$0xff]  ;;  %v2421_v37 = vld [vmem:[#allocation5 + $0x168] sm:$0xff]   ;;  %vm617_vm13 = vcmp.ge.s32.totalorder %v2639_v23, 2  ;;  %vm618_vm15 = vcmp.ge.s32.totalorder %v2671_v49, 2  ;;  %vm1165_vm6 = vcmp.lt.s32.totalorder %v2607_v1, 4 }
  0x35   :  { %2116 = vmatpush3.bf16.msra.mxu0 %v2387_v9  ;;  %2155 = vmatprep.subr.bf16.mxu1 %v2403_v38  ;;  %vm2678_vm10 = vmpackc.low %vm80_vm9, %vm79_vm8  ;;  %v2435_v55 = vld [vmem:[#allocation5 + $0x1d8] sm:$0xff]   ;;  %v2436_v56 = vld [vmem:[#allocation5 + $0x1e0] sm:$0xff]   ;;  %vm1158_vm8 = vcmp.ge.s32.totalorder %v2639_v23, 4 }
  0x36   :  { %2117 = vmatprep.subr.bf16.mxu0 %v2388_v16  ;;  %v2437_v57 = vld [vmem:[#allocation5 + $0x1e8] sm:$0xff]   ;;  %vm2732_vm14 = vmpackc.low %vm617_vm13, %vm616_vm12  ;;  %vm1704_vm13 = vcmp.lt.s32.totalorder %v2625_v14, 6 }
  0x37   :  { %v2477_v1 = vld [vmem:[#allocation5 + $0x2a8] sm:$0xff]  }
  0x38   :  { %2156 = vmatpush3.bf16.msra.mxu1 %v2403_v38 }
  0x39   :  { %2118 = vmatpush3.bf16.msra.mxu0 %v2388_v16  ;;  %2157 = vmatprep.subr.bf16.mxu1 %v2404_v42 }
  0x3a   :  { %2119 = vmatprep.subr.bf16.mxu0 %v2389_v22 }
  0x3c   :  { %2158 = vmatpush3.bf16.msra.mxu1 %v2404_v42  ;;  %v2411_v42 = vld [vmem:[#allocation5 + $0x98] sm:$0xff]  }
  0x3d   :  { %2120 = vmatpush3.bf16.msra.mxu0 %v2389_v22  ;;  %2159 = vmatprep.subr.bf16.mxu1 %v2405_v46 }
  0x3e   :  { %2121 = vmatprep.subr.bf16.mxu0 %v2390_v24 }
  0x40   :  { %2160 = vmatpush3.bf16.msra.mxu1 %v2405_v46  ;;  %v2415_v46 = vld [vmem:[#allocation5 + $0xb8] sm:$0xff]  }
  0x41   :  { %2122 = vmatpush3.bf16.msra.mxu0 %v2390_v24  ;;  %2161 = vmatprep.subr.bf16.mxu1 %v2406_v59 }
  0x42   :  { %2123 = vmatprep.subr.bf16.mxu0 %v2391_v32 }
  0x44   :  { %2162 = vmatpush3.bf16.msra.mxu1 %v2406_v59 }
  0x45   :  { %2124 = vmatpush3.bf16.msra.mxu0 %v2391_v32  ;;  %2163 = vmatprep.subr.bf16.mxu1 %v2407_v60 }
  0x46   :  { %2129 = vmatprep.subr.bf16.mxu0 %v2392_v39 }
  0x48   :  { %2126 = vmatmul.mubr.bf16.vlgmr.msra.gmra.mrb[0].mxu0 %v121_v43  ;;  %2164 = vmatpush3.bf16.msra.mxu1 %v2407_v60  ;;  %v2412_v43 = vld [vmem:[#allocation5 + $0xa0] sm:$0xff]  }
  0x49   :  { %2130 = vmatpush3.bf16.msra.mxu0 %v2392_v39  ;;  %2145 = vmatprep.mubr.msk.bf16.mxu0 %vm2658_vm7, %v1863_v45  ;;  %v2414_v45 = vld [vmem:[#allocation5 + $0xb0] sm:$0xff]  }
  0x4a   :  { %2131 = vmatprep.subr.bf16.mxu0 %v2393_v44  ;;  %2169 = vmatprep.subr.bf16.mxu1 %v2408_v61 }
  0x4d   :  { %2132 = vmatpush3.bf16.msra.mxu0 %v2393_v44  ;;  %v2413_v44 = vld [vmem:[#allocation5 + $0xa8] sm:$0xff]  }
  0x4e   :  { %2133 = vmatprep.subr.bf16.mxu0 %v2394_v47 }
  0x51   :  { %2134 = vmatpush3.bf16.msra.mxu0 %v2394_v47  ;;  %v2422_v47 = vld [vmem:[#allocation5 + $0x170] sm:$0xff]  }
  0x52   :  { %2135 = vmatprep.subr.bf16.mxu0 %v2395_v48 }
  0x55   :  { %2136 = vmatpush3.bf16.msra.mxu0 %v2395_v48  ;;  %v2423_v48 = vld [vmem:[#allocation5 + $0x178] sm:$0xff]  }
  0x56   :  { %2137 = vmatprep.subr.bf16.mxu0 %v2396_v51 }
  0x59   :  { %2138 = vmatpush3.bf16.msra.mxu0 %v2396_v51  ;;  %v2424_v51 = vld [vmem:[#allocation5 + $0x100] sm:$0xff]  }
  0x5a   :  { %2139 = vmatprep.subr.bf16.mxu0 %v2397_v52 }
  0x5d   :  { %2140 = vmatpush3.bf16.msra.mxu0 %v2397_v52  ;;  %v2432_v52 = vld [vmem:[#allocation5 + $0x1c0] sm:$0xff]  }
  0x5e   :  { %2141 = vmatprep.subr.bf16.mxu0 %v2398_v53 }
  0x61   :  { %2142 = vmatpush3.bf16.msra.mxu0 %v2398_v53  ;;  %v2433_v53 = vld [vmem:[#allocation5 + $0x1c8] sm:$0xff]  }
  0x62   :  { %2143 = vmatprep.subr.bf16.mxu0 %v2399_v54 }
  0x65   :  { %2144 = vmatpush3.bf16.msra.mxu0 %v2399_v54  ;;  %v2434_v54 = vld [vmem:[#allocation5 + $0x1d0] sm:$0xff]  }
  0x66   :  { %2189 = vmatprep.subr.bf16.mxu0 %v2416_v62 }
  0x68   :  { %2146 = vmatmul.mubr.msk.bf16.vlgmr.msra.gmra.mrb[0].mxu0 %vm2678_vm10, %v1866_v58  ;;  %v1892_v58 = vld [vmem:[%s2865_s2 + $0x1] ss:$0 sm:$0xff] }
  0x69   :  { %2190 = vmatpush3.bf16.msra.mxu0 %v2416_v62 }
  0x6a   :  { %2191 = vmatprep.subr.bf16.mxu0 %v2417_v63 }
  0x6d   :  { %2192 = vmatpush3.bf16.msra.mxu0 %v2417_v63 }
  0x6e   :  { %2193 = vmatprep.subr.bf16.mxu0 %v2418_v0 }
  0x71   :  { %2194 = vmatpush3.bf16.msra.mxu0 %v2418_v0 }
  0x72   :  { %2195 = vmatprep.subr.bf16.mxu0 %v2419_v2 }
  0x75   :  { %2196 = vmatpush3.bf16.msra.mxu0 %v2419_v2 }
  0x76   :  { %2197 = vmatprep.subr.bf16.mxu0 %v2420_v3 }
  0x79   :  { %2198 = vmatpush3.bf16.msra.mxu0 %v2420_v3 }
  0x7a   :  { %2199 = vmatprep.subr.bf16.mxu0 %v2421_v37 }
  0x7d   :  { %2200 = vmatpush3.bf16.msra.mxu0 %v2421_v37  ;;  %v2448_v37 = vld [vmem:[#allocation5 + $0x240] sm:$0xff]  }
  0x7e   :  { %2201 = vmatprep.subr.bf16.mxu0 %v2422_v47 }
  0x81   :  { %2202 = vmatpush3.bf16.msra.mxu0 %v2422_v47  ;;  %v2449_v47 = vld [vmem:[#allocation5 + $0x248] sm:$0xff]  }
  0x82   :  { %2203 = vmatprep.subr.bf16.mxu0 %v2423_v48 }
  0x85   :  { %2204 = vmatpush3.bf16.msra.mxu0 %v2423_v48  ;;  %v2450_v48 = vld [vmem:[#allocation5 + $0x250] sm:$0xff]  }
  0x86   :  { %2209 = vmatprep.subr.bf16.mxu0 %v2424_v51 }
 0x13b   :  { %v2147_v5 = vpop.f32.mrb[0].mxu0 }
 0x13c   :  { %v342_v7 = vadd.f32 %v2147_v5, %v1868_v4  ;;  %v318_v9 = vpop.f32.mrb[1].mxu0 }
 0x13d   :  { %v340_v10 = vadd.f32 %v1868_v4, %v318_v9  ;;  %v2148_v13 = vpop.f32.mrb[2].mxu0 }
 0x13e   :  { %v346_v16 = vmax.f32 %v342_v7, 0.0  ;;  %v343_v17 = vadd.f32 %v2148_v13, %v1868_v4  ;;  %v321_v18 = vpop.f32.mrb[3].mxu0 }
 0x13f   :  { %v344_v19 = vmax.f32 %v340_v10, 0.0  ;;  %v341_v20 = vadd.f32 %v1868_v4, %v321_v18 }
 0x140   :  { %v347_v22 = vmax.f32 %v343_v17, 0.0  ;;  %v350_v26 = vrot.slane %v346_v16, 7 }
 0x141   :  { %v348_v24 = vrot.slane %v344_v19, 7  ;;  %v345_v25 = vmax.f32 %v341_v20, 0.0 }
 0x142   :  { %v351_v27 = vrot.slane %v347_v22, 7  ;;  %v380_v28 = vpack.c.bf16 %v347_v22, %v346_v16 }
 0x143   :  { %v349_v30 = vrot.slane %v345_v25, 7  ;;  %v379_v32 = vpack.c.bf16 %v345_v25, %v344_v19 }
 0x144   :  { %v352_v33 = vsel %vm85_vm4, %v350_v26, %v351_v27  ;;  %v355_v34 = vsel %vm85_vm4, %v351_v27, %v348_v24 }
 0x145   :  { %v353_v36 = vsel %vm85_vm4, %v349_v30, %v350_v26  ;;  %v354_v38 = vsel %vm85_vm4, %v348_v24, %v349_v30  ;;  %2165 = vmatprep.mubr.bf16.mxu1 %v379_v32  ;;  %v2425_v26 = vld [vmem:[#allocation5 + $0x108] sm:$0xff]   ;;  %v2426_v32 = vld [vmem:[#allocation5 + $0x110] sm:$0xff]   ;;  %vm619_vm4 = vcmp.ge.s32.totalorder %v2674_v50, 2 }
 0x146   :  { %v1889_v39 = vpack.c.bf16 %v352_v33, %v353_v36  ;;  %2166 = vmatmul.mubr.bf16.vlgmr.msra.gmra.mrb[0].mxu1 %v380_v28  ;;  %v1886_v40 = vpack.c.bf16 %v354_v38, %v355_v34  ;;  %v2427_v33 = vld [vmem:[#allocation5 + $0x118] sm:$0xff]   ;;  %v2428_v34 = vld [vmem:[#allocation5 + $0x120] sm:$0xff]   ;;  %v2430_v36 = vld [vmem:[#allocation5 + $0x130] sm:$0xff]  }
 0x147   :  { %2170 = vmatpush3.bf16.msra.mxu1 %v2408_v61  ;;  %v2431_v38 = vld [vmem:[#allocation5 + $0x138] sm:$0xff]   ;;  %vm2745_vm5 = vmpackc.low %vm619_vm4, %vm618_vm15  ;;  %v2453_v28 = vld [vmem:[#allocation5 + $0x268] sm:$0xff]   ;;  %vm1747_vm15 = vcmp.lt.s32.totalorder %v2627_v15, 11  ;;  %vm1745_vm4 = vcmp.lt.s32.totalorder %v2614_v8, 11 }
 0x148   :  { %2185 = vmatprep.mubr.msk.bf16.mxu1 %vm2658_vm7, %v1886_v40  ;;  %2171 = vmatprep.subr.bf16.mxu1 %v2409_v35  ;;  %vm1157_vm7 = vcmp.ge.s32.totalorder %v2636_v21, 4 }
 0x149   :  { %vm2795_vm9 = vmpackc.low %vm1158_vm8, %vm1157_vm7 }
 0x14b   :  { %2172 = vmatpush3.bf16.msra.mxu1 %v2409_v35  ;;  %v2429_v35 = vld [vmem:[#allocation5 + $0x128] sm:$0xff]  }
 0x14c   :  { %2173 = vmatprep.subr.bf16.mxu1 %v2410_v41 }
 0x14f   :  { %2174 = vmatpush3.bf16.msra.mxu1 %v2410_v41 }
 0x150   :  { %2175 = vmatprep.subr.bf16.mxu1 %v2411_v42 }
 0x153   :  { %2176 = vmatpush3.bf16.msra.mxu1 %v2411_v42  ;;  %v2469_v42 = vld [vmem:[#allocation5 + $0x2e8] sm:$0xff]  }
 0x154   :  { %2177 = vmatprep.subr.bf16.mxu1 %v2412_v43 }
 0x157   :  { %2178 = vmatpush3.bf16.msra.mxu1 %v2412_v43 }
 0x158   :  { %2179 = vmatprep.subr.bf16.mxu1 %v2413_v44 }
 0x15b   :  { %2180 = vmatpush3.bf16.msra.mxu1 %v2413_v44  ;;  %v2438_v44 = vld [vmem:[#allocation5 + $0x1f0] sm:$0xff]  }
 0x15c   :  { %2181 = vmatprep.subr.bf16.mxu1 %v2414_v45 }
 0x15f   :  { %2182 = vmatpush3.bf16.msra.mxu1 %v2414_v45  ;;  %v2439_v45 = vld [vmem:[#allocation5 + $0x1f8] sm:$0xff]  }
 0x160   :  { %2183 = vmatprep.subr.bf16.mxu1 %v2415_v46 }
 0x163   :  { %2184 = vmatpush3.bf16.msra.mxu1 %v2415_v46  ;;  %v2440_v46 = vld [vmem:[#allocation5 + $0x180] sm:$0xff]  }
 0x164   :  { %2229 = vmatprep.subr.bf16.mxu1 %v2432_v52 }
 0x166   :  { %2186 = vmatmul.mubr.msk.bf16.vlgmr.msra.gmra.mrb[0].mxu1 %vm2678_vm10, %v1889_v39  ;;  %vm1159_vm10 = vcmp.ge.s32.totalorder %v2671_v49, 4  ;;  %v2471_v49 = vld [vmem:[#allocation5 + $0x2f8] sm:$0xff]  }
 0x167   :  { %2230 = vmatpush3.bf16.msra.mxu1 %v2432_v52  ;;  %v2452_v52 = vld [vmem:[#allocation5 + $0x260] sm:$0xff]  }
 0x168   :  { %2231 = vmatprep.subr.bf16.mxu1 %v2433_v53 }
 0x16b   :  { %2232 = vmatpush3.bf16.msra.mxu1 %v2433_v53  ;;  %v1916_v53 = vld [vmem:[%s2865_s2 + $0x2] ss:$0 sm:$0xff] }
 0x16c   :  { %2233 = vmatprep.subr.bf16.mxu1 %v2434_v54 }
 0x16f   :  { %2234 = vmatpush3.bf16.msra.mxu1 %v2434_v54 }
 0x170   :  { %2235 = vmatprep.subr.bf16.mxu1 %v2435_v55 }
 0x173   :  { %2236 = vmatpush3.bf16.msra.mxu1 %v2435_v55 }
 0x174   :  { %2237 = vmatprep.subr.bf16.mxu1 %v2436_v56 }
 0x177   :  { %2238 = vmatpush3.bf16.msra.mxu1 %v2436_v56 }
 0x178   :  { %2239 = vmatprep.subr.bf16.mxu1 %v2437_v57 }
 0x17b   :  { %2240 = vmatpush3.bf16.msra.mxu1 %v2437_v57 }
 0x17c   :  { %2241 = vmatprep.subr.bf16.mxu1 %v2438_v44 }
 0x17f   :  { %2242 = vmatpush3.bf16.msra.mxu1 %v2438_v44 }
 0x180   :  { %2243 = vmatprep.subr.bf16.mxu1 %v2439_v45 }
 0x183   :  { %2244 = vmatpush3.bf16.msra.mxu1 %v2439_v45 }
 0x184   :  { %2249 = vmatprep.subr.bf16.mxu1 %v2440_v46 }
 0x239   :  { %v2187_v59 = vpop.f32.mrb[0].mxu1 }
 0x23a   :  { %v602_v60 = vadd.f32 %v2187_v59, %v1892_v58  ;;  %v577_v61 = vpop.f32.mrb[1].mxu1 }
 0x23b   :  { %v600_v62 = vadd.f32 %v1892_v58, %v577_v61  ;;  %v2188_v63 = vpop.f32.mrb[2].mxu1 }
 0x23c   :  { %v606_v0 = vmax.f32 %v602_v60, 0.0  ;;  %v603_v2 = vadd.f32 %v2188_v63, %v1892_v58  ;;  %v580_v3 = vpop.f32.mrb[3].mxu1 }
 0x23d   :  { %v604_v4 = vmax.f32 %v600_v62, 0.0  ;;  %v601_v5 = vadd.f32 %v1892_v58, %v580_v3 }
 0x23e   :  { %v607_v7 = vmax.f32 %v603_v2, 0.0  ;;  %v610_v13 = vadd.f32 %v606_v0, %v2647_v29 }
 0x23f   :  { %v608_v9 = vadd.f32 %v604_v4, %v2617_v11  ;;  %v605_v10 = vmax.f32 %v601_v5, 0.0 }
 0x240   :  { %v611_v16 = vadd.f32 %v607_v7, %v2651_v31  ;;  %v2718_v24 = vmax.f32 %v610_v13, 0.0 }
 0x241   :  { %v2709_v17 = vmax.f32 %v608_v9, 0.0  ;;  %v609_v18 = vadd.f32 %v605_v10, %v2619_v12 }
 0x242   :  { %v2712_v19 = vmax.f32 %v611_v16, 0.0  ;;  %v622_v39 = vrot.slane %v2718_v24, 6 }
 0x243   :  { %v620_v20 = vrot.slane %v2709_v17, 6  ;;  %v2716_v22 = vmax.f32 %v609_v18, 0.0  ;;  %v2441_v18 = vld [vmem:[#allocation5 + $0x188] sm:$0xff]  }
 0x244   :  { %v623_v11 = vrot.slane %v2712_v19, 6  ;;  %v661_v31 = vpack.c.bf16 %v2712_v19, %v2718_v24 }
 0x245   :  { %v621_v29 = vrot.slane %v2716_v22, 6  ;;  %v660_v12 = vpack.c.bf16 %v2716_v22, %v2709_v17 }
 0x246   :  { %v628_v25 = vsel %vm624_vm11, %v623_v11, %v620_v20  ;;  %v625_v40 = vsel %vm624_vm11, %v622_v39, %v623_v11 }
 0x247   :  { %2205 = vmatprep.mubr.bf16.mxu0 %v660_v12  ;;  %v627_v27 = vsel %vm624_vm11, %v620_v20, %v621_v29  ;;  %v626_v41 = vsel %vm624_vm11, %v621_v29, %v622_v39  ;;  %v2466_v39 = vld [vmem:[#allocation5 + $0x2d0] sm:$0xff]  }
 0x248   :  { %2206 = vmatmul.mubr.bf16.vlgmr.msra.gmra.mrb[4].mxu0 %v661_v31  ;;  %v1910_v30 = vpack.c.bf16 %v627_v27, %v628_v25  ;;  %v1913_v43 = vpack.c.bf16 %v625_v40, %v626_v41  ;;  %v2442_v31 = vld [vmem:[#allocation5 + $0x190] sm:$0xff]   ;;  %v2443_v25 = vld [vmem:[#allocation5 + $0x198] sm:$0xff]   ;;  %v2445_v27 = vld [vmem:[#allocation5 + $0x1a8] sm:$0xff]  }
 0x249   :  { %2210 = vmatpush3.bf16.msra.mxu0 %v2424_v51  ;;  %v2451_v51 = vld [vmem:[#allocation5 + $0x258] sm:$0xff]   ;;  %v2468_v41 = vld [vmem:[#allocation5 + $0x2e0] sm:$0xff]  }
 0x24a   :  { %2225 = vmatprep.mubr.msk.bf16.mxu0 %vm2732_vm14, %v1910_v30  ;;  %2211 = vmatprep.subr.bf16.mxu0 %v2425_v26  ;;  %v2446_v30 = vld [vmem:[#allocation5 + $0x1b0] sm:$0xff]   ;;  %v2467_v40 = vld [vmem:[#allocation5 + $0x2d8] sm:$0xff]  }
 0x24d   :  { %2212 = vmatpush3.bf16.msra.mxu0 %v2425_v26  ;;  %v2444_v26 = vld [vmem:[#allocation5 + $0x1a0] sm:$0xff]  }
 0x24e   :  { %2213 = vmatprep.subr.bf16.mxu0 %v2426_v32 }
 0x251   :  { %2214 = vmatpush3.bf16.msra.mxu0 %v2426_v32  ;;  %v2447_v32 = vld [vmem:[#allocation5 + $0x1b8] sm:$0xff]  }
 0x252   :  { %2215 = vmatprep.subr.bf16.mxu0 %v2427_v33 }
 0x255   :  { %2216 = vmatpush3.bf16.msra.mxu0 %v2427_v33  ;;  %v2454_v33 = vld [vmem:[#allocation5 + $0x270] sm:$0xff]  }
 0x256   :  { %2217 = vmatprep.subr.bf16.mxu0 %v2428_v34 }
 0x259   :  { %2218 = vmatpush3.bf16.msra.mxu0 %v2428_v34  ;;  %v2455_v34 = vld [vmem:[#allocation5 + $0x278] sm:$0xff]  }
 0x25a   :  { %2219 = vmatprep.subr.bf16.mxu0 %v2429_v35 }
 0x25d   :  { %2220 = vmatpush3.bf16.msra.mxu0 %v2429_v35  ;;  %v2456_v35 = vld [vmem:[#allocation5 + $0x200] sm:$0xff]  }
 0x25e   :  { %2221 = vmatprep.subr.bf16.mxu0 %v2430_v36 }
 0x261   :  { %2222 = vmatpush3.bf16.msra.mxu0 %v2430_v36  ;;  %v2464_v36 = vld [vmem:[#allocation5 + $0x2c0] sm:$0xff]  }
 0x262   :  { %2223 = vmatprep.subr.bf16.mxu0 %v2431_v38 }
 0x265   :  { %2224 = vmatpush3.bf16.msra.mxu0 %v2431_v38  ;;  %v2465_v38 = vld [vmem:[#allocation5 + $0x2c8] sm:$0xff]  }
 0x266   :  { %2269 = vmatprep.subr.bf16.mxu0 %v2448_v37 }
 0x268   :  { %2226 = vmatmul.mubr.msk.bf16.vlgmr.msra.gmra.mrb[4].mxu0 %vm2745_vm5, %v1913_v43  ;;  %v1940_v43 = vld [vmem:[%s2865_s2 + $0x3] ss:$0 sm:$0xff] }
 0x269   :  { %2270 = vmatpush3.bf16.msra.mxu0 %v2448_v37 }
 0x26a   :  { %2271 = vmatprep.subr.bf16.mxu0 %v2449_v47 }
 0x26d   :  { %2272 = vmatpush3.bf16.msra.mxu0 %v2449_v47 }
 0x26e   :  { %2273 = vmatprep.subr.bf16.mxu0 %v2450_v48 }
 0x271   :  { %2274 = vmatpush3.bf16.msra.mxu0 %v2450_v48 }
 0x272   :  { %2275 = vmatprep.subr.bf16.mxu0 %v2451_v51 }
 0x275   :  { %2276 = vmatpush3.bf16.msra.mxu0 %v2451_v51 }
 0x276   :  { %2277 = vmatprep.subr.bf16.mxu0 %v2452_v52 }
 0x279   :  { %2278 = vmatpush3.bf16.msra.mxu0 %v2452_v52 }
 0x27a   :  { %2279 = vmatprep.subr.bf16.mxu0 %v2453_v28 }
 0x27d   :  { %2280 = vmatpush3.bf16.msra.mxu0 %v2453_v28 }
 0x27e   :  { %2281 = vmatprep.subr.bf16.mxu0 %v2454_v33 }
 0x281   :  { %2282 = vmatpush3.bf16.msra.mxu0 %v2454_v33 }
 0x282   :  { %2283 = vmatprep.subr.bf16.mxu0 %v2455_v34 }
 0x285   :  { %2284 = vmatpush3.bf16.msra.mxu0 %v2455_v34 }
 0x286   :  { %2289 = vmatprep.subr.bf16.mxu0 %v2456_v35 }
 0x33b   :  { %v2227_v54 = vpop.f32.mrb[4].mxu0 }
 0x33c   :  { %v883_v55 = vadd.f32 %v2227_v54, %v1916_v53  ;;  %v858_v56 = vpop.f32.mrb[5].mxu0 }
 0x33d   :  { %v881_v57 = vadd.f32 %v1916_v53, %v858_v56  ;;  %v2228_v58 = vpop.f32.mrb[6].mxu0 }
 0x33e   :  { %v887_v59 = vmax.f32 %v883_v55, 0.0  ;;  %v884_v60 = vadd.f32 %v2228_v58, %v1916_v53  ;;  %v861_v61 = vpop.f32.mrb[7].mxu0 }
 0x33f   :  { %v885_v62 = vmax.f32 %v881_v57, 0.0  ;;  %v882_v63 = vadd.f32 %v1916_v53, %v861_v61 }
 0x340   :  { %v888_v0 = vmax.f32 %v884_v60, 0.0  ;;  %v891_v4 = vrot.slane %v887_v59, 6 }
 0x341   :  { %v889_v2 = vrot.slane %v885_v62, 6  ;;  %v886_v3 = vmax.f32 %v882_v63, 0.0 }
 0x342   :  { %v892_v5 = vrot.slane %v888_v0, 6  ;;  %v921_v7 = vpack.c.bf16 %v888_v0, %v887_v59 }
 0x343   :  { %v890_v9 = vrot.slane %v886_v3, 6  ;;  %v920_v10 = vpack.c.bf16 %v886_v3, %v885_v62 }
 0x344   :  { %v893_v13 = vsel %vm624_vm11, %v891_v4, %v892_v5  ;;  %v896_v16 = vsel %vm624_vm11, %v892_v5, %v889_v2 }
 0x345   :  { %v894_v20 = vsel %vm624_vm11, %v890_v9, %v891_v4  ;;  %v895_v11 = vsel %vm624_vm11, %v889_v2, %v890_v9  ;;  %2245 = vmatprep.mubr.bf16.mxu1 %v920_v10  ;;  %v2457_v4 = vld [vmem:[#allocation5 + $0x208] sm:$0xff]   ;;  %v2459_v9 = vld [vmem:[#allocation5 + $0x218] sm:$0xff]   ;;  %v2460_v10 = vld [vmem:[#allocation5 + $0x220] sm:$0xff]   ;;  %vm1160_vm11 = vcmp.ge.s32.totalorder %v2674_v50, 4 }
 0x346   :  { %v1937_v29 = vpack.c.bf16 %v893_v13, %v894_v20  ;;  %2246 = vmatmul.mubr.bf16.vlgmr.msra.gmra.mrb[4].mxu1 %v921_v7  ;;  %v1934_v12 = vpack.c.bf16 %v895_v11, %v896_v16  ;;  %v2458_v7 = vld [vmem:[#allocation5 + $0x210] sm:$0xff]   ;;  %v2461_v13 = vld [vmem:[#allocation5 + $0x228] sm:$0xff]   ;;  %vm2808_vm12 = vmpackc.low %vm1160_vm11, %vm1159_vm10 }
 0x347   :  { %2250 = vmatpush3.bf16.msra.mxu1 %v2440_v46  ;;  %v2462_v16 = vld [vmem:[#allocation5 + $0x230] sm:$0xff]   ;;  %v2472_v50 = vld [vmem:[#allocation5 + $0x280] sm:$0xff]  }
 0x348   :  { %2265 = vmatprep.mubr.msk.bf16.mxu1 %vm2732_vm14, %v1934_v12  ;;  %2251 = vmatprep.subr.bf16.mxu1 %v2441_v18  ;;  %vm1702_vm14 = vcmp.lt.s32.totalorder %v2611_v6, 6 }
 0x34b   :  { %2252 = vmatpush3.bf16.msra.mxu1 %v2441_v18  ;;  %v2463_v18 = vld [vmem:[#allocation5 + $0x238] sm:$0xff]  }
 0x34c   :  { %2253 = vmatprep.subr.bf16.mxu1 %v2442_v31 }
 0x34f   :  { %2254 = vmatpush3.bf16.msra.mxu1 %v2442_v31 }
 0x350   :  { %2255 = vmatprep.subr.bf16.mxu1 %v2443_v25 }
 0x353   :  { %2256 = vmatpush3.bf16.msra.mxu1 %v2443_v25  ;;  %v2470_v25 = vld [vmem:[#allocation5 + $0x2f0] sm:$0xff]  }
 0x354   :  { %2257 = vmatprep.subr.bf16.mxu1 %v2444_v26 }
 0x357   :  { %2258 = vmatpush3.bf16.msra.mxu1 %v2444_v26  ;;  %v1964_v26 = vld [vmem:[%s2865_s2 + $0x4] ss:$0 sm:$0xff] }
 0x358   :  { %2259 = vmatprep.subr.bf16.mxu1 %v2445_v27 }
 0x35b   :  { %2260 = vmatpush3.bf16.msra.mxu1 %v2445_v27 }
 0x35c   :  { %2261 = vmatprep.subr.bf16.mxu1 %v2446_v30 }
 0x35f   :  { %2262 = vmatpush3.bf16.msra.mxu1 %v2446_v30 }
 0x360   :  { %2263 = vmatprep.subr.bf16.mxu1 %v2447_v32 }
 0x363   :  { %2264 = vmatpush3.bf16.msra.mxu1 %v2447_v32 }
 0x364   :  { %2309 = vmatprep.subr.bf16.mxu1 %v2464_v36 }
 0x366   :  { %2266 = vmatmul.mubr.msk.bf16.vlgmr.msra.gmra.mrb[4].mxu1 %vm2745_vm5, %v1937_v29 }
 0x367   :  { %2310 = vmatpush3.bf16.msra.mxu1 %v2464_v36 }
 0x368   :  { %2311 = vmatprep.subr.bf16.mxu1 %v2465_v38 }
 0x36b   :  { %2312 = vmatpush3.bf16.msra.mxu1 %v2465_v38 }
 0x36c   :  { %2313 = vmatprep.subr.bf16.mxu1 %v2466_v39 }
 0x36f   :  { %2314 = vmatpush3.bf16.msra.mxu1 %v2466_v39 }
 0x370   :  { %2315 = vmatprep.subr.bf16.mxu1 %v2467_v40 }
 0x373   :  { %2316 = vmatpush3.bf16.msra.mxu1 %v2467_v40 }
 0x374   :  { %2317 = vmatprep.subr.bf16.mxu1 %v2468_v41 }
 0x377   :  { %2318 = vmatpush3.bf16.msra.mxu1 %v2468_v41 }
 0x378   :  { %2319 = vmatprep.subr.bf16.mxu1 %v2469_v42 }
 0x37b   :  { %2320 = vmatpush3.bf16.msra.mxu1 %v2469_v42 }
 0x37c   :  { %2321 = vmatprep.subr.bf16.mxu1 %v2470_v25 }
 0x37f   :  { %2322 = vmatpush3.bf16.msra.mxu1 %v2470_v25 }
 0x380   :  { %2323 = vmatprep.subr.bf16.mxu1 %v2471_v49 }
 0x383   :  { %2324 = vmatpush3.bf16.msra.mxu1 %v2471_v49 }
 0x384   :  { %2329 = vmatprep.subr.bf16.mxu1 %v2472_v50 }
 0x439   :  { %v2267_v44 = vpop.f32.mrb[4].mxu1 }
 0x43a   :  { %v1143_v45 = vadd.f32 %v2267_v44, %v1940_v43  ;;  %v1118_v46 = vpop.f32.mrb[5].mxu1 }
 0x43b   :  { %v1141_v37 = vadd.f32 %v1940_v43, %v1118_v46  ;;  %v2268_v47 = vpop.f32.mrb[6].mxu1 }
 0x43c   :  { %v1147_v48 = vmax.f32 %v1143_v45, 0.0  ;;  %v1144_v51 = vadd.f32 %v2268_v47, %v1940_v43  ;;  %v1121_v52 = vpop.f32.mrb[7].mxu1 }
 0x43d   :  { %v1145_v53 = vmax.f32 %v1141_v37, 0.0  ;;  %v1142_v54 = vadd.f32 %v1940_v43, %v1121_v52 }
 0x43e   :  { %v1148_v55 = vmax.f32 %v1144_v51, 0.0  ;;  %v1151_v58 = vadd.f32 %v1147_v48, %v2718_v24  ;;  %v2473_v51 = vld [vmem:[#allocation5 + $0x288] sm:$0xff]  }
 0x43f   :  { %v1149_v56 = vadd.f32 %v1145_v53, %v2709_v17  ;;  %v1146_v57 = vmax.f32 %v1142_v54, 0.0 }
 0x440   :  { %v1152_v59 = vadd.f32 %v1148_v55, %v2712_v19  ;;  %v2781_v2 = vmax.f32 %v1151_v58, 0.0  ;;  %v2476_v58 = vld [vmem:[#allocation5 + $0x2a0] sm:$0xff]  }
 0x441   :  { %v2772_v60 = vmax.f32 %v1149_v56, 0.0  ;;  %v1150_v61 = vadd.f32 %v1146_v57, %v2716_v22  ;;  %v2474_v56 = vld [vmem:[#allocation5 + $0x290] sm:$0xff]   ;;  %v2475_v57 = vld [vmem:[#allocation5 + $0x298] sm:$0xff]  }
 0x442   :  { %v2775_v62 = vmax.f32 %v1152_v59, 0.0  ;;  %v1163_v20 = vrot.slane %v2781_v2, 4  ;;  %v2478_v59 = vld [vmem:[#allocation5 + $0x2b0] sm:$0xff]  }
 0x443   :  { %v1161_v63 = vrot.slane %v2772_v60, 4  ;;  %v2779_v0 = vmax.f32 %v1150_v61, 0.0  ;;  %v2479_v61 = vld [vmem:[#allocation5 + $0x2b8] sm:$0xff]  }
 0x444   :  { %v1164_v17 = vrot.slane %v2775_v62, 4  ;;  %v1202_v24 = vpack.c.bf16 %v2775_v62, %v2781_v2 }
 0x445   :  { %v1162_v19 = vrot.slane %v2779_v0, 4  ;;  %v1201_v22 = vpack.c.bf16 %v2779_v0, %v2772_v60 }
 0x446   :  { %v1169_v3 = vsel %vm1165_vm6, %v1164_v17, %v1161_v63  ;;  %v1166_v11 = vsel %vm1165_vm6, %v1163_v20, %v1164_v17 }
 0x447   :  { %2285 = vmatprep.mubr.bf16.mxu0 %v1201_v22  ;;  %v1168_v5 = vsel %vm1165_vm6, %v1161_v63, %v1162_v19  ;;  %v1167_v29 = vsel %vm1165_vm6, %v1162_v19, %v1163_v20  ;;  %v1988_v63 = vld [vmem:[%s2865_s2 + $0x5] ss:$0 sm:$0xff]  ;;  %s2560_s2 = smov [#allocation7]  }
 0x448   :  { %2286 = vmatmul.mubr.bf16.vlgmr.msra.gmra.mrb[8].mxu0 %v1202_v24  ;;  %v1958_v23 = vpack.c.bf16 %v1168_v5, %v1169_v3  ;;  %v1961_v31 = vpack.c.bf16 %v1166_v11, %v1167_v29  ;;  %s1833_s23 = sshll.u32 %s2560_s2, 4  ;;  %s1834_s23 = int_to_ptr.vmem [resolvable:$true] %s1833_s23 }
 0x449   :  { %2290 = vmatpush3.bf16.msra.mxu0 %v2456_v35  ;;  %s2524_s24 = scalar_lea.vmem %s1834_s23, 96  ;;  %p2529_p3 = scmp.lt.s32.totalorder %s1834_s23, %s1834_s23 }
 0x44a   :  { %2305 = vmatprep.mubr.msk.bf16.mxu0 %vm2795_vm9, %v1958_v23  ;;  %2291 = vmatprep.subr.bf16.mxu0 %v2457_v4  ;;  %p2525_p2 = scmp.ne.s32.totalorder %s1834_s23, %s2524_s24  ;;  %p2530_p4 = scmp.lt.s32.totalorder %s2524_s24, %s2524_s24 }
 0x44c   :  { %p2531_p5 = por %p2530_p4, %p2529_p3 }
 0x44d   :  { %2292 = vmatpush3.bf16.msra.mxu0 %v2457_v4 }
 0x44e   :  { %2293 = vmatprep.subr.bf16.mxu0 %v2458_v7  ;;  %p2532_p6 = pnand %p2531_p5, %p2525_p2 }
 0x451   :  { %2294 = vmatpush3.bf16.msra.mxu0 %v2458_v7 }
 0x452   :  { %2295 = vmatprep.subr.bf16.mxu0 %v2459_v9 }
 0x455   :  { %2296 = vmatpush3.bf16.msra.mxu0 %v2459_v9 }
 0x456   :  { %2297 = vmatprep.subr.bf16.mxu0 %v2460_v10 }
 0x459   :  { %2298 = vmatpush3.bf16.msra.mxu0 %v2460_v10 }
 0x45a   :  { %2299 = vmatprep.subr.bf16.mxu0 %v2461_v13 }
 0x45d   :  { %2300 = vmatpush3.bf16.msra.mxu0 %v2461_v13 }
 0x45e   :  { %2301 = vmatprep.subr.bf16.mxu0 %v2462_v16 }
 0x461   :  { %2302 = vmatpush3.bf16.msra.mxu0 %v2462_v16 }
 0x462   :  { %2303 = vmatprep.subr.bf16.mxu0 %v2463_v18 }
 0x465   :  { %2304 = vmatpush3.bf16.msra.mxu0 %v2463_v18 }
 0x468   :  { %2306 = vmatmul.mubr.msk.bf16.vlgmr.msra.gmra.mrb[8].mxu0 %vm2808_vm12, %v1961_v31 }
 0x53b   :  { %v2307_v27 = vpop.f32.mrb[8].mxu0 }
 0x53c   :  { %v1424_v30 = vadd.f32 %v2307_v27, %v1964_v26  ;;  %v1399_v32 = vpop.f32.mrb[9].mxu0 }
 0x53d   :  { %v1422_v28 = vadd.f32 %v1964_v26, %v1399_v32  ;;  %v2308_v33 = vpop.f32.mrb[10].mxu0 }
 0x53e   :  { %v1428_v34 = vmax.f32 %v1424_v30, 0.0  ;;  %v1425_v35 = vadd.f32 %v2308_v33, %v1964_v26  ;;  %v1402_v36 = vpop.f32.mrb[11].mxu0 }
 0x53f   :  { %v1426_v38 = vmax.f32 %v1422_v28, 0.0  ;;  %v1423_v39 = vadd.f32 %v1964_v26, %v1402_v36 }
 0x540   :  { %v1429_v40 = vmax.f32 %v1425_v35, 0.0  ;;  %v1432_v43 = vrot.slane %v1428_v34, 4 }
 0x541   :  { %v1430_v41 = vrot.slane %v1426_v38, 4  ;;  %v1427_v42 = vmax.f32 %v1423_v39, 0.0 }
 0x542   :  { %v1433_v44 = vrot.slane %v1429_v40, 4  ;;  %v1462_v45 = vpack.c.bf16 %v1429_v40, %v1428_v34 }
 0x543   :  { %v1431_v46 = vrot.slane %v1427_v42, 4  ;;  %v1461_v37 = vpack.c.bf16 %v1427_v42, %v1426_v38 }
 0x544   :  { %v1434_v47 = vsel %vm1165_vm6, %v1432_v43, %v1433_v44  ;;  %v1437_v48 = vsel %vm1165_vm6, %v1433_v44, %v1430_v41 }
 0x545   :  { %v1435_v52 = vsel %vm1165_vm6, %v1431_v46, %v1432_v43  ;;  %v1436_v53 = vsel %vm1165_vm6, %v1430_v41, %v1431_v46  ;;  %2325 = vmatprep.mubr.bf16.mxu1 %v1461_v37 }
 0x546   :  { %v1985_v54 = vpack.c.bf16 %v1434_v47, %v1435_v52  ;;  %2326 = vmatmul.mubr.bf16.vlgmr.msra.gmra.mrb[8].mxu1 %v1462_v45  ;;  %v1982_v55 = vpack.c.bf16 %v1436_v53, %v1437_v48 }
 0x547   :  { %2330 = vmatpush3.bf16.msra.mxu1 %v2472_v50 }
 0x548   :  { %2345 = vmatprep.mubr.msk.bf16.mxu1 %vm2795_vm9, %v1982_v55  ;;  %2331 = vmatprep.subr.bf16.mxu1 %v2473_v51 }
 0x54b   :  { %2332 = vmatpush3.bf16.msra.mxu1 %v2473_v51 }
 0x54c   :  { %2333 = vmatprep.subr.bf16.mxu1 %v2474_v56 }
 0x54f   :  { %2334 = vmatpush3.bf16.msra.mxu1 %v2474_v56 }
 0x550   :  { %2335 = vmatprep.subr.bf16.mxu1 %v2475_v57 }
 0x553   :  { %2336 = vmatpush3.bf16.msra.mxu1 %v2475_v57 }
 0x554   :  { %2337 = vmatprep.subr.bf16.mxu1 %v2476_v58 }
 0x557   :  { %2338 = vmatpush3.bf16.msra.mxu1 %v2476_v58 }
 0x558   :  { %2339 = vmatprep.subr.bf16.mxu1 %v2477_v1 }
 0x55b   :  { %2340 = vmatpush3.bf16.msra.mxu1 %v2477_v1 }
 0x55c   :  { %2341 = vmatprep.subr.bf16.mxu1 %v2478_v59 }
 0x55f   :  { %2342 = vmatpush3.bf16.msra.mxu1 %v2478_v59 }
 0x560   :  { %2343 = vmatprep.subr.bf16.mxu1 %v2479_v61 }
 0x563   :  { %2344 = vmatpush3.bf16.msra.mxu1 %v2479_v61 }
 0x566   :  { %2346 = vmatmul.mubr.msk.bf16.vlgmr.msra.gmra.mrb[8].mxu1 %vm2808_vm12, %v1985_v54 }
 0x639   :  { %v2347_v17 = vpop.f32.mrb[8].mxu1 }
 0x63a   :  { %v1684_v19 = vadd.f32 %v2347_v17, %v1988_v63  ;;  %v1659_v22 = vpop.f32.mrb[9].mxu1 }
 0x63b   :  { %v1682_v24 = vadd.f32 %v1988_v63, %v1659_v22  ;;  %v2348_v3 = vpop.f32.mrb[10].mxu1 }
 0x63c   :  { %v1688_v4 = vmax.f32 %v1684_v19, 0.0  ;;  %v1685_v5 = vadd.f32 %v2348_v3, %v1988_v63  ;;  %v1662_v21 = vpop.f32.mrb[11].mxu1 }
 0x63d   :  { %v1686_v23 = vmax.f32 %v1682_v24, 0.0  ;;  %v1683_v7 = vadd.f32 %v1988_v63, %v1662_v21 }
 0x63e   :  { %v1692_v9 = vadd.f32 %v1688_v4, %v2781_v2  ;;  %v1689_v10 = vmax.f32 %v1685_v5, 0.0 }
 0x63f   :  { %v1690_v13 = vadd.f32 %v1686_v23, %v2772_v60  ;;  %v1687_v16 = vmax.f32 %v1683_v7, 0.0 }
 0x640   :  { %v1696_v18 = vmax.f32 %v1692_v9, 0.0  ;;  %v1693_v20 = vadd.f32 %v1689_v10, %v2775_v62 }
 0x641   :  { %v1694_v11 = vmax.f32 %v1690_v13, 0.0  ;;  %v1691_v29 = vadd.f32 %v1687_v16, %v2779_v0 }
 0x642   :  { %v1720_v12 = vsel %vm1704_vm13, %v1696_v18, 0.0  ;;  %v1697_v31 = vmax.f32 %v1693_v20, 0.0  ;;  %v1762_v25 = vsel %vm59_vm2, %v1696_v18, 0.0 }
 0x643   :  { %v1730_v2 = vrot.slane %v1720_v12, 4  ;;  %v1718_v60 = vsel %vm1702_vm14, %v1694_v11, 0.0  ;;  %v1695_v49 = vmax.f32 %v1691_v29, 0.0  ;;  %v1760_v26 = vsel %vm57_vm0, %v1694_v11, 0.0 }
 0x644   :  { %v1723_v50 = vrot.slane %v1718_v60, 4  ;;  %v1763_v62 = vsel %vm1747_vm15, %v1697_v31, 0.0  ;;  %v1805_v27 = vsel %vm68_vm3, %v1697_v31, 0.0  ;;  %vm1740_vm0 = vcmask 1041409  }
 0x645   :  { %v1731_v30 = vadd.f32 %v1730_v2, %v1720_v12  ;;  %v1771_v0 = vadd.f32 %v1763_v62, %v1762_v25  ;;  %v1814_v32 = vrot.slane %v1805_v27, 4  ;;  %v1761_v28 = vsel %vm1745_vm4, %v1695_v49, 0.0 }
 0x646   :  { %v1724_v33 = vadd.f32 %v1723_v50, %v1718_v60  ;;  %v1764_v34 = vadd.f32 %v1761_v28, %v1760_v26  ;;  %v1803_v14 = vsel %vm66_vm1, %v1695_v49, 0.0 }
 0x647   :  { %v1732_v35 = vrot.slane %v1731_v30, 2  ;;  %v1772_v36 = vrot.slane %v1771_v0, 4  ;;  %v1815_v38 = vadd.f32 %v1814_v32, %v1805_v27  ;;  %v1807_v39 = vrot.slane %v1803_v14, 4 }
 0x648   :  { %v1725_v40 = vrot.slane %v1724_v33, 2  ;;  %v1765_v6 = vrot.slane %v1764_v34, 4 }
 0x649   :  { %v1733_v41 = vadd.f32 %v1732_v35, %v1731_v30  ;;  %v1773_v42 = vadd.f32 %v1772_v36, %v1771_v0  ;;  %v1816_v43 = vrot.slane %v1815_v38, 2  ;;  %v1808_v15 = vadd.f32 %v1807_v39, %v1803_v14 }
 0x64a   :  { %v1726_v44 = vadd.f32 %v1725_v40, %v1724_v33  ;;  %v1766_v45 = vadd.f32 %v1765_v6, %v1764_v34 }
 0x64b   :  { %v1734_v46 = vrot.slane %v1733_v41, 1  ;;  %v1774_v37 = vrot.slane %v1773_v42, 2  ;;  %v1817_v47 = vadd.f32 %v1816_v43, %v1815_v38  ;;  %v1809_v48 = vrot.slane %v1808_v15, 2 }
 0x64c   :  { %v1727_v51 = vrot.slane %v1726_v44, 1  ;;  %v1767_v52 = vrot.slane %v1766_v45, 2 }
 0x64d   :  { %v1735_v8 = vadd.f32 %v1734_v46, %v1733_v41  ;;  %v1775_v53 = vadd.f32 %v1774_v37, %v1773_v42  ;;  %v1818_v54 = vrot.slane %v1817_v47, 1  ;;  %v1810_v55 = vadd.f32 %v1809_v48, %v1808_v15 }
 0x64e   :  { %v1728_v56 = vadd.f32 %v1727_v51, %v1726_v44  ;;  %v1768_v57 = vadd.f32 %v1767_v52, %v1766_v45 }
 0x64f   :  { %v1737_v58 = vmul.f32 0.16666667, %v1735_v8  ;;  %v1776_v1 = vrot.slane %v1775_v53, 1  ;;  %v1819_v59 = vadd.f32 %v1818_v54, %v1817_v47  ;;  %v1811_v61 = vrot.slane %v1810_v55, 1 }
 0x650   :  { %v1736_v63 = vmul.f32 0.16666667, %v1728_v56  ;;  %v1769_v17 = vrot.slane %v1768_v57, 1 }
 0x651   :  { %v1777_v19 = vadd.f32 %v1776_v1, %v1775_v53  ;;  %v1821_v22 = vmul.f32 0.2, %v1819_v59  ;;  %v1812_v24 = vadd.f32 %v1811_v61, %v1810_v55 }
 0x652   :  { %v1770_v3 = vadd.f32 %v1769_v17, %v1768_v57  ;;  %v1741_v4 = vsel %vm1740_vm0, %v1737_v58, %v1736_v63 }
 0x653   :  { %v1779_v5 = vmul.f32 0.2, %v1777_v19  ;;  %v1820_v21 = vmul.f32 0.2, %v1812_v24  ;;  %1743 = vst [vmem:[#allocation7] sm:$0x3] %v1741_v4 }
 0x654   :  { %v1778_v23 = vmul.f32 0.2, %v1770_v3 }
 0x655   :  { %v1824_v7 = vsel %vm1740_vm0, %v1821_v22, %v1820_v21 }
 0x656   :  { %v1782_v9 = vsel %vm1740_vm0, %v1779_v5, %v1778_v23  ;;  %1827 = vst [vmem:[#allocation7 + $0x4] sm:$0x3] %v1824_v7 }
 0x657   :  { %1785 = vst [vmem:[#allocation7 + $0x2] sm:$0x3] %v1782_v9 }
 0x658   :  { %2535 = shalt.err (!%p2532_p6)
}
 0x659   :  { %s2536_s27 = scalar_lea.hbm %s2866_s3, 96 }
 0x65a   :  { %p2537_p7 = scmp.ne.s32.totalorder %s2866_s3, %s2536_s27  ;;  %p2540_p8 = scmp.lt.u32.totalorder %s2536_s27, %s2866_s3 }
 0x65c   :  { %p2542_p9 = pnand %p2540_p8, %p2537_p7 }
 0x65e   :  { %2545 = shalt.err (!%p2542_p9)
}
 0x65f   :  { %s2561_s5 = smov 32   ;;  %s2562_s6 = smov 2  }
 0x660   :  { %1839 = dma.vmem_to_hbm [thread:$0]  %s1834_s23, 96, %s2866_s3, [#allocation4], %s2561_s5, %s2561_s5, %s2562_s6  }
 0x661   :  { %2550 = dma.done.wait [#allocation4], 96  }
 0x662   :  { %2551 = vsyncadd [#allocation4], 4294967200 }
 0x663   :  { %1843 = vsyncpa [#allocation3], 1 }
 0x664   :  { %1844 = vsyncpa [#allocation6], 1 }
 0x665   :  { %1845 = vsyncpa [#allocation4], 1 }

</bundles_post_ra>
